<compile_context>
chip_gen: v7x
topology: tpu7x:2x2x1
jax: 0.10.0
libtpu: 0.0.40
codegen_flags: <defaults>
</compile_context>

<pallas_src>
import functools

import jax
import jax.numpy as jnp
import numpy as np
from jax.experimental import pallas as pl
from jax.experimental.pallas import tpu as pltpu

# fixed hyper-parameters from SAMLossMultiInstance.__init__ (all use_* = True)
FOCAL_ALPHA = 0.8          # focal_alpha (gamma == 2.0 -> implemented as square)
FOCAL_W = 20.0             # focal_loss_weight
DICE_W = 1.0               # dice_loss_weight
IOU_W = 1.0                # iou_loss_weight
INST_W = 5.0               # instance_loss_weight


# ----------------------------------------------------------------------------
# Tiling / VMEM helpers
# ----------------------------------------------------------------------------
def _vmem_limit_bytes():
    """Explicit scoped-VMEM limit derived from the physical capacity."""
    try:
        cap = int(pltpu.get_tpu_info().vmem_capacity_bytes)
    except Exception:
        cap = 64 << 20                      # conservative fallback (v7x-sized)
    return int(min(cap * 3 // 4, 96 << 20))


def _pick_rows(R, n_planes, itemsize, target_bytes=1 << 20):
    """Largest multiple-of-8 divisor of R keeping one (pred+targets) input block
    under `target_bytes`, preferring >= 2 pixel tiles so DMA overlaps compute."""
    max_rows = max(8, target_bytes // max(1, n_planes * 128 * itemsize))
    best = None
    r = 8
    limit = min(R // 2, max_rows)
    while r <= limit:
        if R % r == 0:
            best = r
        r += 8
    if best is not None:
        return best
    r = 8
    while r <= R:                           # fallback: any multiple-of-8 divisor
        if R % r == 0:
            best = r
        r += 8
    return best if best is not None else R  # last resort: one full block


def _pick_tile_k(hw, n_planes, itemsize, target_bytes=2 << 20):
    """Largest multiple-of-128 divisor of hw keeping one input block under
    `target_bytes`, preferring >= 2 tiles per image."""
    max_elems = max(128, target_bytes // max(1, n_planes * itemsize))
    best = None
    t = 128
    limit = min(hw // 2, max_elems)
    while t <= limit:
        if hw % t == 0:
            best = t
        t += 128
    return best if best is not None else hw


# ----------------------------------------------------------------------------
# Branch 1 kernel: pred_masks has a single channel.
# Fused single pass: grid (B, n_tiles); IoU stats, greedy match and the
# focal/dice/iou sums all come from one streaming pass (targets are binary).
# ----------------------------------------------------------------------------
def _single_mask_kernel(pred_ref, tgt_ref, out_ref,
                        iacc_ref, sacc_ref, dacc_ref, yacc_ref, gacc_ref):
    # pred_ref: (RT, 128) logits (pixel-packed, sublane-dense)
    # tgt_ref : (N, RT, 128) binary target instances
    # out_ref : (1, 3, 128) per-image [focal_sum, dice_loss, iou_loss]
    t = pl.program_id(1)
    nt = pl.num_programs(1)
    n_inst = tgt_ref.shape[0]

    @pl.when(t == 0)
    def _init():
        iacc_ref[...] = jnp.zeros_like(iacc_ref)
        sacc_ref[...] = jnp.zeros_like(sacc_ref)
        dacc_ref[...] = jnp.zeros_like(dacc_ref)
        yacc_ref[...] = jnp.zeros_like(yacc_ref)
        gacc_ref[...] = jnp.zeros_like(gacc_ref)

    x = pred_ref[...].astype(jnp.float32)           # (RT, 128)
    y = tgt_ref[...].astype(jnp.float32)            # (N, RT, 128)

    # per-pixel prediction-derived quantities (dense vregs: one exp / log1p /
    # approx-reciprocal per pixel; EUP work is 8x lower than in a (1, HW) layout)
    e = jnp.exp(-jnp.abs(x))
    l1p = jnp.log1p(e)
    den = 1.0 + e
    inv = pl.reciprocal(den, approx=True)
    inv = inv * (2.0 - den * inv)                   # one Newton step -> ~f32 exact
    sig = jnp.where(x >= 0.0, inv, e * inv)         # sigmoid(x)
    pb = (x > 0.5).astype(jnp.float32)              # binarized prediction
    relu = jnp.maximum(x, 0.0)
    base0 = relu + l1p                              # BCE(x, y=0)
    base1 = base0 - x                               # BCE(x, y=1)
    oms = 1.0 - sig
    f0 = (1.0 - FOCAL_ALPHA) * (sig * sig) * base0  # focal term when y == 0
    f1 = FOCAL_ALPHA * (oms * oms) * base1          # focal term when y == 1
    df = f1 - f0                                    # focal(x,1) - focal(x,0)

    # combined fallback mask (target_instances.sum(dim=0) > 0); targets binary
    comb = (jnp.sum(y, axis=0) > 0.0).astype(jnp.float32)       # (RT, 128)

    # per-instance lane-partial accumulators (N, 1, 128); binary targets make
    # every matched-target quantity linear in y_j.
    iacc_ref[...] += jnp.sum(pb[None] * y, axis=1, keepdims=True)    # intersection
    sacc_ref[...] += jnp.sum(sig[None] * y, axis=1, keepdims=True)   # sum sig * y_j
    dacc_ref[...] += jnp.sum(df[None] * y, axis=1, keepdims=True)    # focal delta
    yacc_ref[...] += jnp.sum(y, axis=1, keepdims=True)               # sum y_j

    # prediction-global and combined-mask lane partials (6, 128)
    gacc_ref[...] += jnp.concatenate(
        [jnp.sum(pb, axis=0, keepdims=True),          # sum pred_binary
         jnp.sum(sig, axis=0, keepdims=True),         # sum sigmoid
         jnp.sum(f0, axis=0, keepdims=True),          # sum focal(x, 0)
         jnp.sum(comb, axis=0, keepdims=True),        # sum combined mask
         jnp.sum(sig * comb, axis=0, keepdims=True),  # sum sig * combined
         jnp.sum(df * comb, axis=0, keepdims=True)],  # focal delta vs combined
        axis=0)

    @pl.when(t == nt - 1)
    def _finalize():
        inter = jnp.sum(iacc_ref[...], axis=2)        # (N, 1)
        sigy = jnp.sum(sacc_ref[...], axis=2)
        dfy = jnp.sum(dacc_ref[...], axis=2)
        ysum = jnp.sum(yacc_ref[...], axis=2)
        g = jnp.sum(gacc_ref[...], axis=1, keepdims=True)           # (6, 1)
        s_pb, s_sig, s_f0 = g[0, 0], g[1, 0], g[2, 0]
        c_sum, c_sig, c_df = g[3, 0], g[4, 0], g[5, 0]

        # greedy best-IoU match (strict '>' loop == first occurrence of the max)
        union = s_pb + ysum - inter
        iou = jnp.where(union > 0.0, inter / jnp.maximum(union, 1.0), 0.0)
        iou = jnp.where(ysum > 0.0, iou, 0.0)         # empty targets are skipped
        best = jnp.max(iou)
        ridx = jax.lax.broadcasted_iota(jnp.int32, iou.shape, 0)
        first = jnp.min(jnp.where(iou == best, ridx, n_inst))
        sel = (ridx == first).astype(jnp.float32)     # (N, 1) one-hot
        has = (best > 0.0).astype(jnp.float32)        # 0 -> fall back to combined

        m_dfy = has * jnp.sum(sel * dfy) + (1.0 - has) * c_df
        m_sig = has * jnp.sum(sel * sigy) + (1.0 - has) * c_sig
        m_sum = has * jnp.sum(sel * ysum) + (1.0 - has) * c_sum

        focal_sum = s_f0 + m_dfy                      # pixel sum (mean in wrapper)
        tot = s_sig + m_sum
        dice = 1.0 - (2.0 * m_sig + 1.0) / (tot + 1.0)
        iou_l = 1.0 - m_sig / (tot - m_sig + 1e-6)

        lane = jax.lax.broadcasted_iota(jnp.int32, out_ref.shape, 1)
        out_ref[...] = jnp.where(lane == 0, focal_sum,
                                 jnp.where(lane == 1, dice, iou_l))


# ----------------------------------------------------------------------------
# Branch 2 kernel: multi-instance predictions.
# Pairwise BCE = pos_sum[i] - <x_i, y_j>; all reductions ride on the MXU.
# ----------------------------------------------------------------------------
def _instance_match_kernel(hw, pred_ref, tgt_ref, out_ref, acc_ref, tsum_ref):
    # pred_ref: (M, TK) logits; tgt_ref: (N, TK) binary targets
    # out_ref : (1, 1, 128) per-image instance-matching loss (broadcast on lanes)
    t = pl.program_id(1)
    nt = pl.num_programs(1)
    n_pred = pred_ref.shape[0]

    @pl.when(t == 0)
    def _init():
        acc_ref[...] = jnp.zeros_like(acc_ref)
        tsum_ref[...] = jnp.zeros_like(tsum_ref)

    x_raw = pred_ref[...]
    y_raw = tgt_ref[...]
    if y_raw.dtype != x_raw.dtype:                    # static (trace-time) branch
        y_raw = y_raw.astype(x_raw.dtype)
    x = x_raw.astype(jnp.float32)

    # sum_pix BCE(x_i, y_j) = sum_pix(max(x_i,0)+log1p(exp(-|x_i|))) - <x_i, y_j>
    pos = jnp.maximum(x, 0.0) + jnp.log1p(jnp.exp(-jnp.abs(x)))       # (M, TK)
    ones_f32 = jnp.ones((1, x.shape[1]), jnp.float32)
    pos_part = jax.lax.dot_general(                                    # (M, 1)
        pos, ones_f32, (((1,), (1,)), ((), ())),
        preferred_element_type=jnp.float32)
    cross = jax.lax.dot_general(                                       # (M, N)
        x_raw, y_raw, (((1,), (1,)), ((), ())),
        preferred_element_type=jnp.float32)
    acc_ref[...] += pos_part - cross
    ones_in = jnp.ones((1, y_raw.shape[1]), y_raw.dtype)
    tsum_ref[...] += jax.lax.dot_general(                              # (1, N)
        ones_in, y_raw, (((1,), (1,)), ((), ())),
        preferred_element_type=jnp.float32)

    @pl.when(t == nt - 1)
    def _finalize():
        bce = jnp.maximum(acc_ref[...] * (1.0 / hw), 0.0)   # per-pair mean BCE
        # empty targets leave loss_matrix entries at 0 (same quirk as torch)
        entry = jnp.where(tsum_ref[...] == 0.0, 0.0, bce)
        row_min = jnp.min(entry, axis=1, keepdims=True)     # (M, 1)
        val = jnp.sum(row_min) * (1.0 / n_pred)
        out_ref[...] = jnp.zeros(out_ref.shape, jnp.float32) + val


# ----------------------------------------------------------------------------
# Wrapper (tiling, padding, final batch means + loss weighting)
# ----------------------------------------------------------------------------
def sam_loss_multi_instance(pred_masks, target_masks):
    """Forward pass of SAMLossMultiInstance (all use_* flags True).

    Targets must be binary masks (SAM training); bf16 inputs are recommended.
    """
    B, M, H, W = pred_masks.shape
    N = target_masks.shape[1]
    HW = H * W
    vmem_limit = _vmem_limit_bytes()

    # ---- branch 1: single predicted mask per image ---------------------------
    if M == 1:
        tgt = target_masks
        if N == 0:
            # no targets: greedy match falls back to an all-zero combined mask
            tgt = jnp.zeros((B, 1, H, W), jnp.bfloat16)
            N = 1
        # pack the pixel axis as (rows, 128); pad (rare) with very negative
        # logits / zero targets so padded pixels contribute ~0 to every sum.
        pad = (-HW) % 128
        pred2 = pred_masks.reshape(B, HW)
        tgt2 = tgt.reshape(B, N, HW)
        if pad:
            pred2 = jnp.pad(pred2, ((0, 0), (0, pad)), constant_values=-60.0)
            tgt2 = jnp.pad(tgt2, ((0, 0), (0, 0), (0, pad)))
        R = (HW + pad) // 128
        pred_p = pred2.reshape(B, R, 128)
        tgt_p = tgt2.reshape(B, N, R, 128)

        it = max(pred_p.dtype.itemsize, tgt_p.dtype.itemsize)
        rt = _pick_rows(R, N + 1, it)
        n_tiles = R // rt

        bytes_in = (pred_p.size * pred_p.dtype.itemsize
                    + tgt_p.size * tgt_p.dtype.itemsize)
        cost = pl.CostEstimate(flops=int(B * R * 128 * (25 + 10 * N)),
                               transcendentals=int(3 * B * R * 128),
                               bytes_accessed=int(bytes_in))

        out = pl.pallas_call(
            _single_mask_kernel,
            out_shape=jax.ShapeDtypeStruct((B, 3, 128), jnp.float32),
            grid=(B, n_tiles),
            in_specs=[
                pl.BlockSpec((pl.Squeezed(), rt, 128),
                             lambda b, t: (b, t, 0)),
                pl.BlockSpec((pl.Squeezed(), N, rt, 128),
                             lambda b, t: (b, 0, t, 0)),
            ],
            out_specs=pl.BlockSpec((1, 3, 128), lambda b, t: (b, 0, 0)),
            scratch_shapes=[
                pltpu.VMEM((N, 1, 128), jnp.float32),   # sum pb  * y_j
                pltpu.VMEM((N, 1, 128), jnp.float32),   # sum sig * y_j
                pltpu.VMEM((N, 1, 128), jnp.float32),   # sum df  * y_j
                pltpu.VMEM((N, 1, 128), jnp.float32),   # sum y_j
                pltpu.VMEM((6, 128), jnp.float32),      # global / combined sums
            ],
            compiler_params=pltpu.CompilerParams(
                dimension_semantics=("parallel", "arbitrary"),
                vmem_limit_bytes=vmem_limit),
            cost_estimate=cost,
        )(pred_p, tgt_p)

        focal = jnp.sum(out[:, 0, 0]) / float(B * HW)   # mean over (B, 1, H, W)
        dice = jnp.mean(out[:, 1, 0])
        iou = jnp.mean(out[:, 2, 0])
        total = FOCAL_W * focal + DICE_W * dice + IOU_W * iou
        return {"focal_loss": focal, "dice_loss": dice,
                "iou_loss": iou, "total_loss": total}

    # ---- branch 2: multi-instance matching loss ------------------------------
    if M == 0 or N == 0:                                # static shape check
        inst = jnp.float32(1.0)
        return {"instance_loss": inst, "total_loss": INST_W * inst}

    pad = (-HW) % 128
    pred2 = pred_masks.reshape(B, M, HW)
    tgt2 = target_masks.reshape(B, N, HW)
    if pad:
        pred2 = jnp.pad(pred2, ((0, 0), (0, 0), (0, pad)), constant_values=-60.0)
        tgt2 = jnp.pad(tgt2, ((0, 0), (0, 0), (0, pad)))
    HWp = HW + pad

    it = max(pred2.dtype.itemsize, tgt2.dtype.itemsize)
    tk = _pick_tile_k(HWp, M + N, it)
    n_tiles = HWp // tk

    bytes_in = (pred2.size * pred2.dtype.itemsize
                + tgt2.size * tgt2.dtype.itemsize)
    cost = pl.CostEstimate(flops=int(2 * B * M * N * HWp + 10 * B * M * HWp),
                           transcendentals=int(2 * B * M * HWp),
                           bytes_accessed=int(bytes_in))

    out = pl.pallas_call(
        functools.partial(_instance_match_kernel, float(HW)),
        out_shape=jax.ShapeDtypeStruct((B, 1, 128), jnp.float32),
        grid=(B, n_tiles),
        in_specs=[
            pl.BlockSpec((pl.Squeezed(), M, tk), lambda b, t: (b, 0, t)),
            pl.BlockSpec((pl.Squeezed(), N, tk), lambda b, t: (b, 0, t)),
        ],
        out_specs=pl.BlockSpec((1, 1, 128), lambda b, t: (b, 0, 0)),
        scratch_shapes=[
            pltpu.VMEM((M, N), jnp.float32),    # hw * BCE matrix accumulator
            pltpu.VMEM((1, N), jnp.float32),    # per-target pixel counts
        ],
        compiler_params=pltpu.CompilerParams(
            dimension_semantics=("parallel", "arbitrary"),
            vmem_limit_bytes=vmem_limit),
        cost_estimate=cost,
    )(pred2, tgt2)

    inst = jnp.mean(out[:, 0, 0])
    return {"instance_loss": inst, "total_loss": INST_W * inst}


# ----------------------------------------------------------------------------
# Pure numpy references (mirror the PyTorch module) for verification
# ----------------------------------------------------------------------------
def _ref_single(pred, tgt):
    pred = np.asarray(pred, np.float32)
    tgt = np.asarray(tgt, np.float32)
    B = pred.shape[0]
    matched = []
    for b in range(B):
        pm, ti = pred[b, 0], tgt[b]
        best_iou, best = 0.0, None
        for i in range(ti.shape[0]):
            tm = ti[i]
            if tm.sum() == 0:
                continue
            pb = (pm > 0.5).astype(np.float32)
            tb = (tm > 0.5).astype(np.float32)
            inter = (pb * tb).sum()
            union = pb.sum() + tb.sum() - inter
            iou = float(inter / union) if union > 0 else 0.0
            if iou > best_iou:
                best_iou, best = iou, tm
        if best is None:
            best = (ti.sum(0) > 0).astype(np.float32)
        matched.append(best)
    y = np.stack(matched)[:, None]
    x = pred
    s = 1.0 / (1.0 + np.exp(-x))
    ce = np.maximum(x, 0) - x * y + np.log1p(np.exp(-np.abs(x)))
    p_t = s * y + (1 - s) * (1 - y)
    a_t = FOCAL_ALPHA * y + (1 - FOCAL_ALPHA) * (1 - y)
    focal = float((a_t * (1 - p_t) ** 2 * ce).mean())
    inter = (s * y).sum(axis=(-2, -1))
    tot = s.sum(axis=(-2, -1)) + y.sum(axis=(-2, -1))
    dice = float((1 - (2 * inter + 1) / (tot + 1)).mean())
    iou = float((1 - inter / (tot - inter + 1e-6)).mean())
    return focal, dice, iou, FOCAL_W * focal + DICE_W * dice + IOU_W * iou


def _ref_instance(pred, tgt):
    pred = np.asarray(pred, np.float32)
    tgt = np.asarray(tgt, np.float32)
    B = pred.shape[0]
    losses = []
    for b in range(B):
        p, t = pred[b], tgt[b]
        np_, nt = p.shape[0], t.shape[0]
        mat = np.zeros((np_, nt), np.float32)
        for i in range(np_):
            for j in range(nt):
                if t[j].sum() == 0:
                    continue
                x, y = p[i], t[j]
                ce = np.maximum(x, 0) - x * y + np.log1p(np.exp(-np.abs(x)))
                mat[i, j] = ce.mean()
        losses.append(mat.min(axis=1).mean())
    inst = float(np.mean(losses))
    return inst, INST_W * inst


if __name__ == "__main__":
    key = jax.random.PRNGKey(0)
    k1, k2, k3 = jax.random.split(key, 3)
    B, H, W, N = 2, 32, 64, 3        # HW = 2048 -> 16 packed rows -> 2 pixel tiles

    # bf16 inputs (targets are binary -> exact); shapes chosen so both kernels
    # run with 2 pixel tiles, exercising multi-tile accumulation + finalize.
    pred1 = (jax.random.normal(k1, (B, 1, H, W), jnp.float32) * 2.0).astype(jnp.bfloat16)
    tgt = (jax.random.uniform(k2, (B, N, H, W)) > 0.6).astype(jnp.bfloat16)
    tgt = tgt.at[0, 2].set(0.0)      # one empty instance -> exercises the skip path

    # branch 1: single predicted mask per image
    out1 = sam_loss_multi_instance(pred1, tgt)
    jax.block_until_ready(out1["total_loss"])

    pred1_np = np.asarray(pred1.astype(jnp.float32))
    tgt_np = np.asarray(tgt.astype(jnp.float32))
    rf, rd, ri, rtot = _ref_single(pred1_np, tgt_np)
    np.testing.assert_allclose(float(out1["focal_loss"]), rf, rtol=1e-3, atol=1e-4)
    np.testing.assert_allclose(float(out1["dice_loss"]), rd, rtol=1e-3, atol=1e-4)
    np.testing.assert_allclose(float(out1["iou_loss"]), ri, rtol=1e-3, atol=1e-4)
    np.testing.assert_allclose(float(out1["total_loss"]), rtot, rtol=1e-3, atol=5e-4)

    # branch 2: multiple predicted instances -> pairwise BCE matching loss
    pred2 = (jax.random.normal(k3, (B, 2, H, W), jnp.float32) * 2.0).astype(jnp.bfloat16)
    out2 = sam_loss_multi_instance(pred2, tgt)
    jax.block_until_ready(out2["total_loss"])

    r_inst, r_tot = _ref_instance(np.asarray(pred2.astype(jnp.float32)), tgt_np)
    np.testing.assert_allclose(float(out2["instance_loss"]), r_inst, rtol=5e-4, atol=1e-5)
    np.testing.assert_allclose(float(out2["total_loss"]), r_tot, rtol=5e-4, atol=1e-4)

    print("KERNEL_OK")
</pallas_src>

<mosaic_0001>
module attributes {stable_mosaic.version = 11 : i64} {
  func.func @_single_mask_kernel(%arg0: i32, %arg1: i32, %arg2: memref<1x8x128xbf16, #tpu.memory_space<vmem>>, %arg3: memref<1x3x8x128xbf16, #tpu.memory_space<vmem>>, %arg4: memref<1x3x128xf32, #tpu.memory_space<vmem>>, %arg5: memref<3x1x128xf32, #tpu.memory_space<vmem>>, %arg6: memref<3x1x128xf32, #tpu.memory_space<vmem>>, %arg7: memref<3x1x128xf32, #tpu.memory_space<vmem>>, %arg8: memref<3x1x128xf32, #tpu.memory_space<vmem>>, %arg9: memref<6x128xf32, #tpu.memory_space<vmem>>) attributes {dimension_semantics = [#tpu.dimension_semantics<parallel>, #tpu.dimension_semantics<arbitrary>], iteration_bounds = array<i64: 2, 2>, scalar_prefetch = 0 : i64, scratch_operands = 5 : i64, tpu.core_type = #tpu.core_type<tc>, window_params = [{transform_indices = @transform_0, window_bounds = array<i64: 1, 8, 128>}, {transform_indices = @transform_1, window_bounds = array<i64: 1, 3, 8, 128>}, {transform_indices = @transform_2, window_bounds = array<i64: 1, 3, 128>}]} {
    %c0_i32 = arith.constant 0 : i32
    %0 = arith.cmpi eq, %arg1, %c0_i32 : i32
    %1 = arith.extui %0 : i1 to i32
    %c0_i32_0 = arith.constant 0 : i32
    %2 = arith.cmpi ne, %1, %c0_i32_0 : i32
    scf.if %2 {
      %cst_56 = arith.constant 0.000000e+00 : f32
      %99 = vector.broadcast %cst_56 : f32 to vector<3x1x128xf32>
      %c0_57 = arith.constant 0 : index
      %c0_58 = arith.constant 0 : index
      %c0_59 = arith.constant 0 : index
      %100 = vector.load %arg5[%c0_57, %c0_58, %c0_59] : memref<3x1x128xf32, #tpu.memory_space<vmem>>, vector<3x1x128xf32>
      tpu.vector_store %arg5[%c0_57, %c0_58, %c0_59], %99 {strides = array<i32>} : memref<3x1x128xf32, #tpu.memory_space<vmem>>, vector<3x1x128xf32>,
      %cst_60 = arith.constant 0.000000e+00 : f32
      %101 = vector.broadcast %cst_60 : f32 to vector<3x1x128xf32>
      %c0_61 = arith.constant 0 : index
      %c0_62 = arith.constant 0 : index
      %c0_63 = arith.constant 0 : index
      %102 = vector.load %arg6[%c0_61, %c0_62, %c0_63] : memref<3x1x128xf32, #tpu.memory_space<vmem>>, vector<3x1x128xf32>
      tpu.vector_store %arg6[%c0_61, %c0_62, %c0_63], %101 {strides = array<i32>} : memref<3x1x128xf32, #tpu.memory_space<vmem>>, vector<3x1x128xf32>,
      %cst_64 = arith.constant 0.000000e+00 : f32
      %103 = vector.broadcast %cst_64 : f32 to vector<3x1x128xf32>
      %c0_65 = arith.constant 0 : index
      %c0_66 = arith.constant 0 : index
      %c0_67 = arith.constant 0 : index
      %104 = vector.load %arg7[%c0_65, %c0_66, %c0_67] : memref<3x1x128xf32, #tpu.memory_space<vmem>>, vector<3x1x128xf32>
      tpu.vector_store %arg7[%c0_65, %c0_66, %c0_67], %103 {strides = array<i32>} : memref<3x1x128xf32, #tpu.memory_space<vmem>>, vector<3x1x128xf32>,
      %cst_68 = arith.constant 0.000000e+00 : f32
      %105 = vector.broadcast %cst_68 : f32 to vector<3x1x128xf32>
      %c0_69 = arith.constant 0 : index
      %c0_70 = arith.constant 0 : index
      %c0_71 = arith.constant 0 : index
      %106 = vector.load %arg8[%c0_69, %c0_70, %c0_71] : memref<3x1x128xf32, #tpu.memory_space<vmem>>, vector<3x1x128xf32>
      tpu.vector_store %arg8[%c0_69, %c0_70, %c0_71], %105 {strides = array<i32>} : memref<3x1x128xf32, #tpu.memory_space<vmem>>, vector<3x1x128xf32>,
      %cst_72 = arith.constant 0.000000e+00 : f32
      %107 = vector.broadcast %cst_72 : f32 to vector<6x128xf32>
      %c0_73 = arith.constant 0 : index
      %c0_74 = arith.constant 0 : index
      %108 = vector.load %arg9[%c0_73, %c0_74] : memref<6x128xf32, #tpu.memory_space<vmem>>, vector<6x128xf32>
      tpu.vector_store %arg9[%c0_73, %c0_74], %107 {strides = array<i32>} : memref<6x128xf32, #tpu.memory_space<vmem>>, vector<6x128xf32>,
    } else {
    }
    %c0 = arith.constant 0 : index
    %c0_1 = arith.constant 0 : index
    %c0_2 = arith.constant 0 : index
    %3 = vector.load %arg2[%c0, %c0_1, %c0_2] : memref<1x8x128xbf16, #tpu.memory_space<vmem>>, vector<1x8x128xbf16>
    %4 = vector.shape_cast %3 : vector<1x8x128xbf16> to vector<8x128xbf16>
    %5 = arith.extf %4 : vector<8x128xbf16> to vector<8x128xf32>
    %c0_3 = arith.constant 0 : index
    %c0_4 = arith.constant 0 : index
    %c0_5 = arith.constant 0 : index
    %c0_6 = arith.constant 0 : index
    %6 = vector.load %arg3[%c0_3, %c0_4, %c0_5, %c0_6] : memref<1x3x8x128xbf16, #tpu.memory_space<vmem>>, vector<1x3x8x128xbf16>
    %7 = vector.shape_cast %6 : vector<1x3x8x128xbf16> to vector<3x8x128xbf16>
    %8 = arith.extf %7 : vector<3x8x128xbf16> to vector<3x8x128xf32>
    %9 = math.absf %5 : vector<8x128xf32>
    %cst = arith.constant 0.000000e+00 : f32
    %10 = vector.broadcast %cst : f32 to vector<8x128xf32>
    %11 = arith.subf %10, %9 : vector<8x128xf32>
    %12 = math.exp %11 : vector<8x128xf32>
    %13 = math.log1p %12 : vector<8x128xf32>
    %cst_7 = arith.constant 1.000000e+00 : f32
    %14 = vector.broadcast %cst_7 : f32 to vector<8x128xf32>
    %15 = arith.addf %14, %12 : vector<8x128xf32>
    %16 = tpu.reciprocal %15 {approx = true} : vector<8x128xf32> -> vector<8x128xf32>
    %17 = arith.mulf %15, %16 : vector<8x128xf32>
    %cst_8 = arith.constant 2.000000e+00 : f32
    %18 = vector.broadcast %cst_8 : f32 to vector<8x128xf32>
    %19 = arith.subf %18, %17 : vector<8x128xf32>
    %20 = arith.mulf %16, %19 : vector<8x128xf32>
    %cst_9 = arith.constant 0.000000e+00 : f32
    %21 = vector.broadcast %cst_9 : f32 to vector<8x128xf32>
    %22 = arith.cmpf oge, %5, %21 : vector<8x128xf32>
    %23 = arith.mulf %12, %20 : vector<8x128xf32>
    %24 = arith.select %22, %20, %23 : vector<8x128xi1>, vector<8x128xf32>
    %cst_10 = arith.constant 5.000000e-01 : f32
    %25 = vector.broadcast %cst_10 : f32 to vector<8x128xf32>
    %26 = arith.cmpf ogt, %5, %25 : vector<8x128xf32>
    %27 = arith.extui %26 : vector<8x128xi1> to vector<8x128xi32>
    %28 = arith.sitofp %27 : vector<8x128xi32> to vector<8x128xf32>
    %cst_11 = arith.constant 0.000000e+00 : f32
    %29 = vector.broadcast %cst_11 : f32 to vector<8x128xf32>
    %30 = arith.maximumf %5, %29 : vector<8x128xf32>
    %31 = arith.addf %30, %13 : vector<8x128xf32>
    %32 = arith.subf %31, %5 : vector<8x128xf32>
    %cst_12 = arith.constant 1.000000e+00 : f32
    %33 = vector.broadcast %cst_12 : f32 to vector<8x128xf32>
    %34 = arith.subf %33, %24 : vector<8x128xf32>
    %35 = arith.mulf %24, %24 : vector<8x128xf32>
    %cst_13 = arith.constant 2.000000e-01 : f32
    %36 = vector.broadcast %cst_13 : f32 to vector<8x128xf32>
    %37 = arith.mulf %36, %35 : vector<8x128xf32>
    %38 = arith.mulf %37, %31 : vector<8x128xf32>
    %39 = arith.mulf %34, %34 : vector<8x128xf32>
    %cst_14 = arith.constant 8.000000e-01 : f32
    %40 = vector.broadcast %cst_14 : f32 to vector<8x128xf32>
    %41 = arith.mulf %40, %39 : vector<8x128xf32>
    %42 = arith.mulf %41, %32 : vector<8x128xf32>
    %43 = arith.subf %42, %38 : vector<8x128xf32>
    %cst_15 = arith.constant dense<0.000000e+00> : vector<8x128xf32>
    %44 = vector.multi_reduction <add>, %8, %cst_15 [0] : vector<3x8x128xf32> to vector<8x128xf32>
    %cst_16 = arith.constant 0.000000e+00 : f32
    %45 = vector.broadcast %cst_16 : f32 to vector<8x128xf32>
    %46 = arith.cmpf ogt, %44, %45 : vector<8x128xf32>
    %47 = arith.extui %46 : vector<8x128xi1> to vector<8x128xi32>
    %48 = arith.sitofp %47 : vector<8x128xi32> to vector<8x128xf32>
    %c0_17 = arith.constant 0 : index
    %c0_18 = arith.constant 0 : index
    %c0_19 = arith.constant 0 : index
    %49 = vector.load %arg5[%c0_17, %c0_18, %c0_19] : memref<3x1x128xf32, #tpu.memory_space<vmem>>, vector<3x1x128xf32>
    %50 = vector.shape_cast %28 : vector<8x128xf32> to vector<1x8x128xf32>
    %51 = vector.broadcast %50 : vector<1x8x128xf32> to vector<3x8x128xf32>
    %52 = arith.mulf %51, %8 : vector<3x8x128xf32>
    %cst_20 = arith.constant dense<0.000000e+00> : vector<3x128xf32>
    %53 = vector.multi_reduction <add>, %52, %cst_20 [1] : vector<3x8x128xf32> to vector<3x128xf32>
    %54 = vector.shape_cast %53 : vector<3x128xf32> to vector<3x1x128xf32>
    %55 = arith.addf %49, %54 : vector<3x1x128xf32>
    %c0_21 = arith.constant 0 : index
    %c0_22 = arith.constant 0 : index
    %c0_23 = arith.constant 0 : index
    %56 = vector.load %arg5[%c0_21, %c0_22, %c0_23] : memref<3x1x128xf32, #tpu.memory_space<vmem>>, vector<3x1x128xf32>
    tpu.vector_store %arg5[%c0_21, %c0_22, %c0_23], %55 {strides = array<i32>} : memref<3x1x128xf32, #tpu.memory_space<vmem>>, vector<3x1x128xf32>,
    %c0_24 = arith.constant 0 : index
    %c0_25 = arith.constant 0 : index
    %c0_26 = arith.constant 0 : index
    %57 = vector.load %arg6[%c0_24, %c0_25, %c0_26] : memref<3x1x128xf32, #tpu.memory_space<vmem>>, vector<3x1x128xf32>
    %58 = vector.shape_cast %24 : vector<8x128xf32> to vector<1x8x128xf32>
    %59 = vector.broadcast %58 : vector<1x8x128xf32> to vector<3x8x128xf32>
    %60 = arith.mulf %59, %8 : vector<3x8x128xf32>
    %cst_27 = arith.constant dense<0.000000e+00> : vector<3x128xf32>
    %61 = vector.multi_reduction <add>, %60, %cst_27 [1] : vector<3x8x128xf32> to vector<3x128xf32>
    %62 = vector.shape_cast %61 : vector<3x128xf32> to vector<3x1x128xf32>
    %63 = arith.addf %57, %62 : vector<3x1x128xf32>
    %c0_28 = arith.constant 0 : index
    %c0_29 = arith.constant 0 : index
    %c0_30 = arith.constant 0 : index
    %64 = vector.load %arg6[%c0_28, %c0_29, %c0_30] : memref<3x1x128xf32, #tpu.memory_space<vmem>>, vector<3x1x128xf32>
    tpu.vector_store %arg6[%c0_28, %c0_29, %c0_30], %63 {strides = array<i32>} : memref<3x1x128xf32, #tpu.memory_space<vmem>>, vector<3x1x128xf32>,
    %c0_31 = arith.constant 0 : index
    %c0_32 = arith.constant 0 : index
    %c0_33 = arith.constant 0 : index
    %65 = vector.load %arg7[%c0_31, %c0_32, %c0_33] : memref<3x1x128xf32, #tpu.memory_space<vmem>>, vector<3x1x128xf32>
    %66 = vector.shape_cast %43 : vector<8x128xf32> to vector<1x8x128xf32>
    %67 = vector.broadcast %66 : vector<1x8x128xf32> to vector<3x8x128xf32>
    %68 = arith.mulf %67, %8 : vector<3x8x128xf32>
    %cst_34 = arith.constant dense<0.000000e+00> : vector<3x128xf32>
    %69 = vector.multi_reduction <add>, %68, %cst_34 [1] : vector<3x8x128xf32> to vector<3x128xf32>
    %70 = vector.shape_cast %69 : vector<3x128xf32> to vector<3x1x128xf32>
    %71 = arith.addf %65, %70 : vector<3x1x128xf32>
    %c0_35 = arith.constant 0 : index
    %c0_36 = arith.constant 0 : index
    %c0_37 = arith.constant 0 : index
    %72 = vector.load %arg7[%c0_35, %c0_36, %c0_37] : memref<3x1x128xf32, #tpu.memory_space<vmem>>, vector<3x1x128xf32>
    tpu.vector_store %arg7[%c0_35, %c0_36, %c0_37], %71 {strides = array<i32>} : memref<3x1x128xf32, #tpu.memory_space<vmem>>, vector<3x1x128xf32>,
    %c0_38 = arith.constant 0 : index
    %c0_39 = arith.constant 0 : index
    %c0_40 = arith.constant 0 : index
    %73 = vector.load %arg8[%c0_38, %c0_39, %c0_40] : memref<3x1x128xf32, #tpu.memory_space<vmem>>, vector<3x1x128xf32>
    %cst_41 = arith.constant dense<0.000000e+00> : vector<3x128xf32>
    %74 = vector.multi_reduction <add>, %8, %cst_41 [1] : vector<3x8x128xf32> to vector<3x128xf32>
    %75 = vector.shape_cast %74 : vector<3x128xf32> to vector<3x1x128xf32>
    %76 = arith.addf %73, %75 : vector<3x1x128xf32>
    %c0_42 = arith.constant 0 : index
    %c0_43 = arith.constant 0 : index
    %c0_44 = arith.constant 0 : index
    %77 = vector.load %arg8[%c0_42, %c0_43, %c0_44] : memref<3x1x128xf32, #tpu.memory_space<vmem>>, vector<3x1x128xf32>
    tpu.vector_store %arg8[%c0_42, %c0_43, %c0_44], %76 {strides = array<i32>} : memref<3x1x128xf32, #tpu.memory_space<vmem>>, vector<3x1x128xf32>,
    %c0_45 = arith.constant 0 : index
    %c0_46 = arith.constant 0 : index
    %78 = vector.load %arg9[%c0_45, %c0_46] : memref<6x128xf32, #tpu.memory_space<vmem>>, vector<6x128xf32>
    %cst_47 = arith.constant dense<0.000000e+00> : vector<128xf32>
    %79 = vector.multi_reduction <add>, %28, %cst_47 [0] : vector<8x128xf32> to vector<128xf32>
    %80 = vector.shape_cast %79 : vector<128xf32> to vector<1x128xf32>
    %cst_48 = arith.constant dense<0.000000e+00> : vector<128xf32>
    %81 = vector.multi_reduction <add>, %24, %cst_48 [0] : vector<8x128xf32> to vector<128xf32>
    %82 = vector.shape_cast %81 : vector<128xf32> to vector<1x128xf32>
    %cst_49 = arith.constant dense<0.000000e+00> : vector<128xf32>
    %83 = vector.multi_reduction <add>, %38, %cst_49 [0] : vector<8x128xf32> to vector<128xf32>
    %84 = vector.shape_cast %83 : vector<128xf32> to vector<1x128xf32>
    %cst_50 = arith.constant dense<0.000000e+00> : vector<128xf32>
    %85 = vector.multi_reduction <add>, %48, %cst_50 [0] : vector<8x128xf32> to vector<128xf32>
    %86 = vector.shape_cast %85 : vector<128xf32> to vector<1x128xf32>
    %87 = arith.mulf %24, %48 : vector<8x128xf32>
    %cst_51 = arith.constant dense<0.000000e+00> : vector<128xf32>
    %88 = vector.multi_reduction <add>, %87, %cst_51 [0] : vector<8x128xf32> to vector<128xf32>
    %89 = vector.shape_cast %88 : vector<128xf32> to vector<1x128xf32>
    %90 = arith.mulf %43, %48 : vector<8x128xf32>
    %cst_52 = arith.constant dense<0.000000e+00> : vector<128xf32>
    %91 = vector.multi_reduction <add>, %90, %cst_52 [0] : vector<8x128xf32> to vector<128xf32>
    %92 = vector.shape_cast %91 : vector<128xf32> to vector<1x128xf32>
    %93 = tpu.concatenate %80, %82, %84, %86, %89, %92 in 0 : vector<1x128xf32>, vector<1x128xf32>, vector<1x128xf32>, vector<1x128xf32>, vector<1x128xf32>, vector<1x128xf32> -> vector<6x128xf32>
    %94 = arith.addf %78, %93 : vector<6x128xf32>
    %c0_53 = arith.constant 0 : index
    %c0_54 = arith.constant 0 : index
    %95 = vector.load %arg9[%c0_53, %c0_54] : memref<6x128xf32, #tpu.memory_space<vmem>>, vector<6x128xf32>
    tpu.vector_store %arg9[%c0_53, %c0_54], %94 {strides = array<i32>} : memref<6x128xf32, #tpu.memory_space<vmem>>, vector<6x128xf32>,
    %c1_i32 = arith.constant 1 : i32
    %96 = arith.cmpi eq, %arg1, %c1_i32 : i32
    %97 = arith.extui %96 : i1 to i32
    %c0_i32_55 = arith.constant 0 : i32
    %98 = arith.cmpi ne, %97, %c0_i32_55 : i32
    scf.if %98 {
      %c0_56 = arith.constant 0 : index
      %c0_57 = arith.constant 0 : index
      %c0_58 = arith.constant 0 : index
      %99 = vector.load %arg5[%c0_56, %c0_57, %c0_58] : memref<3x1x128xf32, #tpu.memory_space<vmem>>, vector<3x1x128xf32>
      %cst_59 = arith.constant dense<0.000000e+00> : vector<3x1xf32>
      %100 = vector.multi_reduction <add>, %99, %cst_59 [2] : vector<3x1x128xf32> to vector<3x1xf32>
      %c0_60 = arith.constant 0 : index
      %c0_61 = arith.constant 0 : index
      %c0_62 = arith.constant 0 : index
      %101 = vector.load %arg6[%c0_60, %c0_61, %c0_62] : memref<3x1x128xf32, #tpu.memory_space<vmem>>, vector<3x1x128xf32>
      %cst_63 = arith.constant dense<0.000000e+00> : vector<3x1xf32>
      %102 = vector.multi_reduction <add>, %101, %cst_63 [2] : vector<3x1x128xf32> to vector<3x1xf32>
      %c0_64 = arith.constant 0 : index
      %c0_65 = arith.constant 0 : index
      %c0_66 = arith.constant 0 : index
      %103 = vector.load %arg7[%c0_64, %c0_65, %c0_66] : memref<3x1x128xf32, #tpu.memory_space<vmem>>, vector<3x1x128xf32>
      %cst_67 = arith.constant dense<0.000000e+00> : vector<3x1xf32>
      %104 = vector.multi_reduction <add>, %103, %cst_67 [2] : vector<3x1x128xf32> to vector<3x1xf32>
      %c0_68 = arith.constant 0 : index
      %c0_69 = arith.constant 0 : index
      %c0_70 = arith.constant 0 : index
      %105 = vector.load %arg8[%c0_68, %c0_69, %c0_70] : memref<3x1x128xf32, #tpu.memory_space<vmem>>, vector<3x1x128xf32>
      %cst_71 = arith.constant dense<0.000000e+00> : vector<3x1xf32>
      %106 = vector.multi_reduction <add>, %105, %cst_71 [2] : vector<3x1x128xf32> to vector<3x1xf32>
      %c0_72 = arith.constant 0 : index
      %c0_73 = arith.constant 0 : index
      %107 = vector.load %arg9[%c0_72, %c0_73] : memref<6x128xf32, #tpu.memory_space<vmem>>, vector<6x128xf32>
      %cst_74 = arith.constant dense<0.000000e+00> : vector<6xf32>
      %108 = vector.multi_reduction <add>, %107, %cst_74 [1] : vector<6x128xf32> to vector<6xf32>
      %109 = vector.shape_cast %108 : vector<6xf32> to vector<6x1xf32>
      %110 = vector.extract_strided_slice %109 {offsets = [0, 0], sizes = [1, 1], strides = [1, 1]} : vector<6x1xf32> to vector<1x1xf32>
      %111 = vector.extract %110[0, 0] : f32 from vector<1x1xf32>
      %112 = vector.extract_strided_slice %109 {offsets = [1, 0], sizes = [1, 1], strides = [1, 1]} : vector<6x1xf32> to vector<1x1xf32>
      %113 = vector.extract %112[0, 0] : f32 from vector<1x1xf32>
      %114 = vector.extract_strided_slice %109 {offsets = [2, 0], sizes = [1, 1], strides = [1, 1]} : vector<6x1xf32> to vector<1x1xf32>
      %115 = vector.extract %114[0, 0] : f32 from vector<1x1xf32>
      %116 = vector.extract_strided_slice %109 {offsets = [3, 0], sizes = [1, 1], strides = [1, 1]} : vector<6x1xf32> to vector<1x1xf32>
      %117 = vector.extract %116[0, 0] : f32 from vector<1x1xf32>
      %118 = vector.extract_strided_slice %109 {offsets = [4, 0], sizes = [1, 1], strides = [1, 1]} : vector<6x1xf32> to vector<1x1xf32>
      %119 = vector.extract %118[0, 0] : f32 from vector<1x1xf32>
      %120 = vector.extract_strided_slice %109 {offsets = [5, 0], sizes = [1, 1], strides = [1, 1]} : vector<6x1xf32> to vector<1x1xf32>
      %121 = vector.extract %120[0, 0] : f32 from vector<1x1xf32>
      %122 = vector.broadcast %111 : f32 to vector<3x1xf32>
      %123 = arith.addf %122, %106 : vector<3x1xf32>
      %124 = arith.subf %123, %100 : vector<3x1xf32>
      %cst_75 = arith.constant 0.000000e+00 : f32
      %125 = vector.broadcast %cst_75 : f32 to vector<3x1xf32>
      %126 = arith.cmpf ogt, %124, %125 : vector<3x1xf32>
      %cst_76 = arith.constant 1.000000e+00 : f32
      %127 = vector.broadcast %cst_76 : f32 to vector<3x1xf32>
      %128 = arith.maximumf %124, %127 : vector<3x1xf32>
      %129 = arith.divf %100, %128 : vector<3x1xf32>
      %cst_77 = arith.constant 0.000000e+00 : f32
      %130 = vector.broadcast %cst_77 : f32 to vector<3x1xf32>
      %131 = arith.select %126, %129, %130 : vector<3x1xi1>, vector<3x1xf32>
      %cst_78 = arith.constant 0.000000e+00 : f32
      %132 = vector.broadcast %cst_78 : f32 to vector<3x1xf32>
      %133 = arith.cmpf ogt, %106, %132 : vector<3x1xf32>
      %cst_79 = arith.constant 0.000000e+00 : f32
      %134 = vector.broadcast %cst_79 : f32 to vector<3x1xf32>
      %135 = arith.select %133, %131, %134 : vector<3x1xi1>, vector<3x1xf32>
      %136 = vector.shape_cast %135 : vector<3x1xf32> to vector<1x3x1xf32>
      %cst_80 = arith.constant dense<0xFF800000> : vector<1xf32>
      %137 = vector.multi_reduction <maximumf>, %136, %cst_80 [1, 2] : vector<1x3x1xf32> to vector<1xf32>
      %138 = vector.shape_cast %137 : vector<1xf32> to vector<1x1x1xf32>
      %139 = vector.extract %138[0, 0, 0] : f32 from vector<1x1x1xf32>
      %140 = tpu.iota {dimensions = array<i32: 0>} : vector<3x1xi32>
      %141 = vector.broadcast %139 : f32 to vector<3x1xf32>
      %142 = arith.cmpf oeq, %135, %141 : vector<3x1xf32>
      %c3_i32 = arith.constant 3 : i32
      %143 = vector.broadcast %c3_i32 : i32 to vector<3x1xi32>
      %144 = arith.select %142, %140, %143 : vector<3x1xi1>, vector<3x1xi32>
      %145 = vector.shape_cast %144 : vector<3x1xi32> to vector<1x3x1xi32>
      %cst_81 = arith.constant dense<2147483647> : vector<1xi32>
      %146 = vector.multi_reduction <minsi>, %145, %cst_81 [1, 2] : vector<1x3x1xi32> to vector<1xi32>
      %147 = vector.shape_cast %146 : vector<1xi32> to vector<1x1x1xi32>
      %148 = vector.extract %147[0, 0, 0] : i32 from vector<1x1x1xi32>
      %149 = vector.broadcast %148 : i32 to vector<3x1xi32>
      %150 = arith.cmpi eq, %140, %149 : vector<3x1xi32>
      %151 = arith.extui %150 : vector<3x1xi1> to vector<3x1xi32>
      %152 = arith.sitofp %151 : vector<3x1xi32> to vector<3x1xf32>
      %cst_82 = arith.constant 0.000000e+00 : f32
      %153 = arith.cmpf ogt, %139, %cst_82 : f32
      %154 = arith.extui %153 : i1 to i32
      %155 = arith.sitofp %154 : i32 to f32
      %156 = arith.mulf %152, %104 : vector<3x1xf32>
      %157 = vector.shape_cast %156 : vector<3x1xf32> to vector<1x3x1xf32>
      %cst_83 = arith.constant dense<0.000000e+00> : vector<1xf32>
      %158 = vector.multi_reduction <add>, %157, %cst_83 [1, 2] : vector<1x3x1xf32> to vector<1xf32>
      %159 = vector.shape_cast %158 : vector<1xf32> to vector<1x1x1xf32>
      %160 = vector.extract %159[0, 0, 0] : f32 from vector<1x1x1xf32>
      %161 = arith.mulf %155, %160 : f32
      %cst_84 = arith.constant 1.000000e+00 : f32
      %162 = arith.subf %cst_84, %155 : f32
      %163 = arith.mulf %162, %121 : f32
      %164 = arith.addf %161, %163 : f32
      %165 = arith.mulf %152, %102 : vector<3x1xf32>
      %166 = vector.shape_cast %165 : vector<3x1xf32> to vector<1x3x1xf32>
      %cst_85 = arith.constant dense<0.000000e+00> : vector<1xf32>
      %167 = vector.multi_reduction <add>, %166, %cst_85 [1, 2] : vector<1x3x1xf32> to vector<1xf32>
      %168 = vector.shape_cast %167 : vector<1xf32> to vector<1x1x1xf32>
      %169 = vector.extract %168[0, 0, 0] : f32 from vector<1x1x1xf32>
      %170 = arith.mulf %155, %169 : f32
      %cst_86 = arith.constant 1.000000e+00 : f32
      %171 = arith.subf %cst_86, %155 : f32
      %172 = arith.mulf %171, %119 : f32
      %173 = arith.addf %170, %172 : f32
      %174 = arith.mulf %152, %106 : vector<3x1xf32>
      %175 = vector.shape_cast %174 : vector<3x1xf32> to vector<1x3x1xf32>
      %cst_87 = arith.constant dense<0.000000e+00> : vector<1xf32>
      %176 = vector.multi_reduction <add>, %175, %cst_87 [1, 2] : vector<1x3x1xf32> to vector<1xf32>
      %177 = vector.shape_cast %176 : vector<1xf32> to vector<1x1x1xf32>
      %178 = vector.extract %177[0, 0, 0] : f32 from vector<1x1x1xf32>
      %179 = arith.mulf %155, %178 : f32
      %cst_88 = arith.constant 1.000000e+00 : f32
      %180 = arith.subf %cst_88, %155 : f32
      %181 = arith.mulf %180, %117 : f32
      %182 = arith.addf %179, %181 : f32
      %183 = arith.addf %115, %164 : f32
      %184 = arith.addf %113, %182 : f32
      %cst_89 = arith.constant 2.000000e+00 : f32
      %185 = arith.mulf %cst_89, %173 : f32
      %cst_90 = arith.constant 1.000000e+00 : f32
      %186 = arith.addf %185, %cst_90 : f32
      %cst_91 = arith.constant 1.000000e+00 : f32
      %187 = arith.addf %184, %cst_91 : f32
      %188 = arith.divf %186, %187 : f32
      %cst_92 = arith.constant 1.000000e+00 : f32
      %189 = arith.subf %cst_92, %188 : f32
      %190 = arith.subf %184, %173 : f32
      %cst_93 = arith.constant 9.99999997E-7 : f32
      %191 = arith.addf %190, %cst_93 : f32
      %192 = arith.divf %173, %191 : f32
      %cst_94 = arith.constant 1.000000e+00 : f32
      %193 = arith.subf %cst_94, %192 : f32
      %194 = tpu.iota {dimensions = array<i32: 1>} : vector<1x3x128xi32>
      %c0_i32_95 = arith.constant 0 : i32
      %195 = vector.broadcast %c0_i32_95 : i32 to vector<1x3x128xi32>
      %196 = arith.cmpi eq, %194, %195 : vector<1x3x128xi32>
      %c1_i32_96 = arith.constant 1 : i32
      %197 = vector.broadcast %c1_i32_96 : i32 to vector<1x3x128xi32>
      %198 = arith.cmpi eq, %194, %197 : vector<1x3x128xi32>
      %199 = vector.broadcast %189 : f32 to vector<1x3x128xf32>
      %200 = vector.broadcast %193 : f32 to vector<1x3x128xf32>
      %201 = arith.select %198, %199, %200 : vector<1x3x128xi1>, vector<1x3x128xf32>
      %202 = vector.broadcast %183 : f32 to vector<1x3x128xf32>
      %203 = arith.select %196, %202, %201 : vector<1x3x128xi1>, vector<1x3x128xf32>
      %c0_97 = arith.constant 0 : index
      %c0_98 = arith.constant 0 : index
      %c0_99 = arith.constant 0 : index
      %204 = vector.load %arg4[%c0_97, %c0_98, %c0_99] : memref<1x3x128xf32, #tpu.memory_space<vmem>>, vector<1x3x128xf32>
      tpu.vector_store %arg4[%c0_97, %c0_98, %c0_99], %203 {strides = array<i32>} : memref<1x3x128xf32, #tpu.memory_space<vmem>>, vector<1x3x128xf32>,
    } else {
    }
    return
  }
  func.func @transform_0(%arg0: i32, %arg1: i32) -> (i32, i32, i32) {
    %c0_i32 = arith.constant 0 : i32
    %c0_i32_0 = arith.constant 0 : i32
    return %arg0, %arg1, %c0_i32 : i32, i32, i32
  }
  func.func @transform_1(%arg0: i32, %arg1: i32) -> (i32, i32, i32, i32) {
    %c0_i32 = arith.constant 0 : i32
    %c0_i32_0 = arith.constant 0 : i32
    %c0_i32_1 = arith.constant 0 : i32
    return %arg0, %c0_i32, %arg1, %c0_i32_0 : i32, i32, i32, i32
  }
  func.func @transform_2(%arg0: i32, %arg1: i32) -> (i32, i32, i32) {
    %c0_i32 = arith.constant 0 : i32
    %c0_i32_0 = arith.constant 0 : i32
    %c0_i32_1 = arith.constant 0 : i32
    return %arg0, %c0_i32, %c0_i32_0 : i32, i32, i32
  }
}

</mosaic_0001>

<bundles_post_ra>
// kernel: tpu_custom_call.1
= control target key start
LH: loop header
LB: loop body
LE: loop exit
PB: predicated region body
PF: predicated region fallthrough
CT: control target
= control target key end

     0   :  { %s1429_s0 = inlined_call_operand.hbm [shape: bf16[2,16,128], index: 0, kind: input, shape index: {}]   ;;  %s1430_s1 = inlined_call_operand.hbm [shape: bf16[2,3,16,128], index: 1, kind: input, shape index: {}]   ;;  %s1431_s2 = inlined_call_operand.vmem [shape: f32[2,3,128], index: 2, kind: output, shape index: {}]  }
   0x1   :  { %1434 = sst [smem:[#allocation14_spill]] %s1429_s0 }
   0x2   :  { %1435 = sst [smem:[#allocation15_spill]] %s1430_s1 }
   0x3   :  { %1436 = sst [smem:[#allocation16_spill]] %s1431_s2 }
   0x4   :  { %7 = vsyncpa [#allocation8], 0 }
   0x5   :  { %9 = vsyncpa [#allocation8 + $0x1], 0 }
   0x6   :  { %10 = vsyncpa [#allocation10], 0 }
   0x7   :  { %12 = vsyncpa [#allocation10 + $0x1], 0  ;;  %s1106_s9 = smov 0   ;;  %s1108_s10 = smov 0  }
   0x8   :  { %s1110_s11 = smov 0   ;;  %s1112_s12 = smov 0  }
   0x9   :  { %s1114_s13 = smov 0   ;;  %s1116_s14 = smov 0  }
   0xa   :  { %s1118_s15 = smov 0   ;;  %s1120_s16 = smov 0  }
   0xb LB: > { %s802_s17 = sadd.s32 4294967295, %s1081_s16   ;;  %s27_s18 = sadd.s32 1, %s1073_s14  ;;  %s1081_s16 = sphi %s1120_s16, %s18_s16   ;;  %s1077_s15 = sphi %s1118_s15, %s1454_s15   ;;  %s1073_s14 = sphi %s1116_s14, %s1453_s14   ;;  %s1069_s13 = sphi %s1114_s13, %s1452_s13   ;;  %s1065_s12 = sphi %s1112_s12, %s1451_s12   ;;  %s1061_s11 = sphi %s1110_s11, %s1450_s11   ;;  %s1057_s10 = sphi %s1108_s10, %s1449_s10   ;;  %s1053_s9 = sphi %s1106_s9, %s1448_s9  }
   0xc   : > { %p28_p0 = scmp.ge.s32.totalorder %s27_s18, 2  ;;  %s30_s19 = sadd.s32 1, %s1077_s15 }
   0xd   : > { %s39_s20 = sadd.s32 1, %s1061_s11  ;;  %p46_p1 = scmp.ne.s32.totalorder %s1061_s11, %s1057_s10 }
   0xe   : > { %s1456_s18 = smov (%p28_p0, %s27_s18), 0  ;;  %s1458_s19 = smov (!%p28_p0, %s30_s19), %s1077_s15 }
   0xf   : > { %s35_s21 = ssub.s32 %s1073_s14, %s1456_s18  ;;  %p47_p2 = scmp.eq.s32.totalorder %s1081_s16, 0 }
  0x10   : > { %p32_p3 = scmp.ge.s32.totalorder %s1458_s19, 2  ;;  %p52_p4 = scmp.ne.s32.totalorder %s1057_s10, %s1053_s9 }
  0x11   : > { %p1157_p5 = por %p47_p2, %p46_p1  ;;  %p53_p6 = scmp.eq.s32.totalorder %s802_s17, 0 }
  0x12   : > { %s1460_s19 = smov (%p32_p3, %s1458_s19), 0  ;;  %p864_p8 = scmp.lt.s32.totalorder %s1081_s16, 4 }
  0x13   : > { %1438 = sst [smem:[#allocation13_spill]] %s1460_s19  ;;  %p1163_p7 = por %p53_p6, %p52_p4 }
  0x14   : > { %s34_s24 = ssub.s32 %s1077_s15, %s1460_s19  ;;  %s1171_s26 = sand.u32 1, %s1061_s11  }
  0x15   : > { %s1439_s23 = scalar_select %p1163_p7, 1, 0 }
  0x16   : > { %s36_s25 = sor.u32 %s35_s21, %s34_s24  ;;  %s806_s27 = sshll.u32 %s1171_s26, 2 }
  0x17   : > { %p37_p9 = scmp.eq.s32.totalorder %s36_s25, 0  ;;  %s807_s28 = sshll.u32 %s1077_s15, 1 }
  0x18   : > { %s139_s30 = sadd.s32 %s1073_s14, %s807_s28  ;;  %s134_s4 = scalar_lea.vmem [#allocation7], %s806_s27 }
  0x19   : > { %s1176_s29 = scalar_select %p37_p9, %s1061_s11, %s39_s20  }
  0x1a   : > { %s808_s3 = sshll.u32 %s139_s30, 6  ;;  %s143_s5 = sshll.u32 %s134_s4, 4  ;;  %s1184_s5 = int_to_ptr.vmem [resolvable:$true] %s143_s5 }
  0x1b   : > { %s1440_s0 = sld [smem:[#allocation14_spill]]  ;;  %p1190_p10 = pnand %p864_p8, %p1157_p5 }
  0x1c   : > { %s824_s17 = smul.u32 12, %s1171_s26  ;;  %s131_s21 = scalar_lea.sflag [#allocation8], %s1171_s26 }
  0x1d   : > { %s825_s20 = smul.u32 6, %s1077_s15  ;;  %p953_p13 = pneg %p1190_p10 }
  0x21   : > { %s1182_s8 = scalar_lea.hbm %s1440_s0, %s808_s3  ;;  %s956_s27 = scalar_lea.hbm %s1440_s0, 256 }
  0x22   : > { %s951_s24 = scalar_lea.hbm %s1182_s8, 64  ;;  %p957_p2 = scmp.lt.u32.totalorder %s1182_s8, %s1440_s0 }
  0x23   : > { %p952_p12 = scmp.ne.s32.totalorder %s1182_s8, %s951_s24  ;;  %p958_p3 = scmp.lt.u32.totalorder %s956_s27, %s951_s24 }
  0x24   : > { %p960_p5 = scmp.lt.u32.totalorder %s951_s24, %s1182_s8 }
  0x25   : > { %p954_p0 = pnand %p953_p13, %p952_p12  ;;  %p959_p4 = por %p958_p3, %p957_p2 }
  0x27   : > { %p955_p1 = pneg %p954_p0  ;;  %p961_p6 = por %p960_p5, %p959_p4 }
  0x29   : > { %p962_p8 = pnand %p961_p6, %p955_p1 }
  0x2b   : > { %965 = shalt.err (!%p962_p8)
}
  0x2c   : > { %s966_s3 = scalar_lea.vmem %s1184_s5, 64  ;;  %s1083_s4 = smov [#allocation7]  }
  0x2d   : > { %p967_p9 = scmp.ne.s32.totalorder %s1184_s5, %s966_s3  ;;  %s971_s6 = sshll.u32 %s1083_s4, 4  ;;  %s972_s6 = int_to_ptr.vmem [resolvable:$false] %s971_s6 }
  0x2e   : > { %s973_s7 = scalar_lea.vmem %s972_s6, 128  ;;  %p974_p11 = scmp.lt.s32.totalorder %s1184_s5, %s972_s6 }
  0x2f   : > { %p969_p12 = pnand %p967_p9, %p953_p13  ;;  %p975_p2 = scmp.lt.s32.totalorder %s973_s7, %s966_s3 }
  0x31   : > { %p970_p0 = pneg %p969_p12  ;;  %p976_p3 = por %p975_p2, %p974_p11 }
  0x33   : > { %p977_p4 = pnand %p976_p3, %p970_p0 }
  0x35   : > { %980 = shalt.err (!%p977_p4)
}
  0x36   : > { %860 = dma.hbm_to_vmem [thread:$0]  (!%p1190_p10), %s1182_s8, 64, %s1184_s5, %s131_s21  }
  0x37   : > { %s159_s24 = sadd.s32 %s1073_s14, %s825_s20  ;;  %p170_p1 = scmp.lt.s32.totalorder %s1081_s16, 5 }
  0x38   : > { %s809_s22 = sshll.u32 %s159_s24, 6  ;;  %s1442_s1 = sld [smem:[#allocation15_spill]] }
  0x39   : > { %s154_s30 = scalar_lea.vmem [#allocation9], %s824_s17  ;;  %p1443_p11 = scmp.ge.s32.totalorder %s1081_s16, 1 }
  0x3a   : > { %s162_s3 = sshll.u32 %s154_s30, 4  ;;  %s151_s5 = scalar_lea.sflag [#allocation10], %s1171_s26  ;;  %s1240_s3 = int_to_ptr.vmem [resolvable:$true] %s162_s3 }
  0x3b   : > { %p1236_p5 = pnand %p1443_p11, %p170_p1 }
  0x3e   : > { %s1230_s28 = scalar_lea.hbm %s1442_s1, %s809_s22  ;;  %s986_s6 = scalar_lea.hbm %s1442_s1, 768 }
  0x3f   : > { %s981_s8 = scalar_lea.hbm %s1230_s28, 192  ;;  %p987_p12 = scmp.lt.u32.totalorder %s1230_s28, %s1442_s1 }
  0x40   : > { %p982_p6 = scmp.ne.s32.totalorder %s1230_s28, %s981_s8  ;;  %p988_p0 = scmp.lt.u32.totalorder %s986_s6, %s981_s8 }
  0x41   : > { %p990_p3 = scmp.lt.u32.totalorder %s981_s8, %s1230_s28 }
  0x42   : > { %p984_p8 = pnand %p982_p6, %p953_p13  ;;  %p989_p2 = por %p988_p0, %p987_p12 }
  0x44   : > { %p985_p9 = pneg %p984_p8  ;;  %p991_p4 = por %p990_p3, %p989_p2 }
  0x46   : > { %p992_p1 = pnand %p991_p4, %p985_p9 }
  0x48   : > { %995 = shalt.err (!%p992_p1)
}
  0x49   : > { %s996_s24 = scalar_lea.vmem %s1240_s3, 192  ;;  %s1084_s22 = smov [#allocation9]  }
  0x4a   : > { %p997_p11 = scmp.ne.s32.totalorder %s1240_s3, %s996_s24  ;;  %s1001_s25 = sshll.u32 %s1084_s22, 4  ;;  %s1002_s25 = int_to_ptr.vmem [resolvable:$false] %s1001_s25 }
  0x4b   : > { %s1003_s27 = scalar_lea.vmem %s1002_s25, 384  ;;  %p1004_p7 = scmp.lt.s32.totalorder %s1240_s3, %s1002_s25 }
  0x4c   : > { %p999_p6 = pnand %p997_p11, %p953_p13  ;;  %p1005_p12 = scmp.lt.s32.totalorder %s1003_s27, %s996_s24 }
  0x4e   : > { %p1000_p8 = pneg %p999_p6  ;;  %p1006_p0 = por %p1005_p12, %p1004_p7 }
  0x50   : > { %p1007_p2 = pnand %p1006_p0, %p1000_p8 }
  0x52   : > { %1010 = shalt.err (!%p1007_p2)
}
  0x53   : > { %s1085_s30 = smov 128   ;;  %s1086_s8 = smov 64  }
  0x54   : > { %s1087_s20 = smov 4   ;;  %174 = sbr.rel (%p1236_p5) target bundleno = 1106 (0x452), region = 28 }
  0x55   : > { %863 = dma.hbm_to_vmem [thread:$0]  (!%p1190_p10), %s1230_s28, 192, %s1240_s3, %s151_s5, %s1085_s30, %s1086_s8, %s1087_s20  }
  0x56   : > { %s176_s21 = sand.u32 (!%p1236_p5), 1, %s1057_s10   ;;  %p1445_p7 = scmp.ne.s32.totalorder (!%p1236_p5), %s1439_s23, 0 }
  0x57   : > { %s811_s6 = sshll.u32 (!%p1236_p5), %s176_s21, 2  ;;  %s177_s17 = scalar_lea.sflag (!%p1236_p5), [#allocation8], %s176_s21 }
  0x58   : > { %s180_s7 = scalar_lea.vmem (!%p1236_p5), [#allocation7], %s811_s6 }
  0x5b   : > { %1044 = dma.done.wait (%p1445_p7), %s177_s17, 64  }
  0x5c   : > { %1046 = vsyncadd (%p1445_p7), %s177_s17, 4294967232  ;;  %s826_s24 = smul.u32 12, %s176_s21  ;;  %s186_s22 = scalar_lea.sflag [#allocation10], %s176_s21 }
  0x5e   : > { %s189_s9 = scalar_lea.vmem [#allocation9], %s826_s24 }
  0x5f   : > { %1048 = dma.done.wait (%p1445_p7), %s186_s22, 192  }
  0x60   : > { %1050 = vsyncadd (%p1445_p7), %s186_s22, 4294967104  ;;  %p214_p10 = scmp.lt.s32.totalorder %s1069_s13, 1  ;;  %s1446_s2 = sld [smem:[#allocation16_spill]] }
  0x61   : > { %p813_p13 = scmp.ne.s32.totalorder %s1065_s12, 0 }
  0x62   : > { %s1462_s13 = smov (!%p214_p10, %s1069_s13), 1  ;;  %v1088_v0 = vmov (!%p813_p13), 0.0  }
  0x63   : > { %s812_s26 = sshll.u32 %s1462_s13, 2  ;;  %221 = sbr.rel (%p813_p13) target bundleno = 106 (0x6a), region = 40  ;;  %222 = vst [vmem:[#allocation2] sm:$0x1] (!%p813_p13), %v1088_v0  ;;  %223 = vst [vmem:[#allocation2 + $0x1] sm:$0x1] (!%p813_p13), %v1088_v0 }
  0x64   : > { %224 = vst [vmem:[#allocation2 + $0x2] sm:$0x1] (!%p813_p13), %v1088_v0  ;;  %225 = vst [vmem:[#allocation3] sm:$0x1] (!%p813_p13), %v1088_v0 }
  0x65   : > { %226 = vst [vmem:[#allocation3 + $0x1] sm:$0x1] (!%p813_p13), %v1088_v0  ;;  %227 = vst [vmem:[#allocation3 + $0x2] sm:$0x1] (!%p813_p13), %v1088_v0 }
  0x66   : > { %s1284_s4 = scalar_lea.vmem %s1446_s2, %s812_s26  ;;  %228 = vst [vmem:[#allocation4] sm:$0x1] (!%p813_p13), %v1088_v0  ;;  %229 = vst [vmem:[#allocation4 + $0x1] sm:$0x1] (!%p813_p13), %v1088_v0 }
  0x67   : > { %230 = vst [vmem:[#allocation4 + $0x2] sm:$0x1] (!%p813_p13), %v1088_v0  ;;  %231 = vst [vmem:[#allocation5] sm:$0x1] (!%p813_p13), %v1088_v0 }
  0x68   : > { %232 = vst [vmem:[#allocation5 + $0x1] sm:$0x1] (!%p813_p13), %v1088_v0  ;;  %233 = vst [vmem:[#allocation5 + $0x2] sm:$0x1] (!%p813_p13), %v1088_v0 }
  0x69   : > { %234 = vst [vmem:[#allocation6] sm:$0x3f] (!%p813_p13), %v1088_v0 }
  0x6a PF: > { %v235_v1 = vld [vmem:[%s180_s7] sm:$0xf]  ;;  %v821_v2 = vld [vmem:[%s189_s9] sm:$0xff]   ;;  %v239_v4 = vld [vmem:[%s189_s9 + $0x8] sm:$0xf]  ;;  %v1089_v9 = vmov 0.0  }
  0x6b   : > { %v1287_v3 = vunpack.c.l.bf16 %v235_v1  ;;  %v1289_v5 = vunpack.c.l.bf16 %v821_v2  ;;  %v1293_v7 = vunpack.c.h.bf16 %v821_v2  ;;  %v1295_v8 = vunpack.c.l.bf16 %v239_v4  ;;  %v283_v50 = vld [vmem:[#allocation2] sm:$0x1]  ;;  %v284_v51 = vld [vmem:[#allocation2 + $0x1] sm:$0x1]  ;;  %v285_v52 = vld [vmem:[#allocation2 + $0x2] sm:$0x1] }
  0x6c   : > { %vm439_vm4 = vcmask 1040384   ;;  %vm441_vm5 = vcmask 1041408   ;;  %vm443_vm6 = vcmask 1042432   ;;  %vm445_vm7 = vcmask 1043456   ;;  %p816_p5 = scmp.ne.s32.totalorder %s1065_s12, 1 }
  0x6d   : > { %v243_v6 = vand.u32 2147483647, %v1287_v3  ;;  %vm264_vm0 = vcmp.gt.f32.partialorder %v1287_v3, 0.5  ;;  %v376_v11 = vrot.slane %v1289_v5, 4  ;;  %v382_v17 = vrot.slane %v1293_v7, 4 }
  0x6e   : > { %v1298_v10 = vsel %vm264_vm0, 1.0, %v1089_v9  ;;  %v388_v18 = vrot.slane %v1295_v8, 4  ;;  %v373_v41 = vld [vmem:[#allocation5] sm:$0x1]  ;;  %v278_v2 = vadd.f32 %v1293_v7, %v1289_v5  ;;  %vm261_vm3 = vcmp.ge.f32.partialorder %v1287_v3, 0.0 }
  0x6f   : > { %v244_v12 = vsub.f32 0.0, %v243_v6  ;;  %v286_v13 = vmul.f32 %v1289_v5, %v1298_v10  ;;  %v287_v14 = vmul.f32 %v1293_v7, %v1298_v10  ;;  %v288_v15 = vmul.f32 %v1298_v10, %v1295_v8  ;;  %v374_v43 = vld [vmem:[#allocation5 + $0x1] sm:$0x1]  ;;  %v375_v49 = vld [vmem:[#allocation5 + $0x2] sm:$0x1] }
  0x70   : > { %v377_v16 = vadd.f32 %v1289_v5, %v376_v11  ;;  %v383_v24 = vadd.f32 %v1293_v7, %v382_v17  ;;  %v389_v25 = vadd.f32 %v388_v18, %v1295_v8  ;;  %v279_v6 = vadd.f32 %v278_v2, %v1295_v8 }
  0x71   : > { %v245_v19 = vmul.f32 1.442695, %v244_v12  ;;  %v289_v20 = vrot.slane %v286_v13, 4  ;;  %v295_v21 = vrot.slane %v287_v14, 4  ;;  %v301_v22 = vrot.slane %v288_v15, 4 }
  0x72   : > { %v378_v23 = vrot.slane %v377_v16, 2  ;;  %v384_v30 = vrot.slane %v383_v24, 2  ;;  %v390_v31 = vrot.slane %v389_v25, 2  ;;  %vm280_vm1 = vcmp.gt.f32.partialorder %v279_v6, 0.0 }
  0x73   : > { %935 = vpow2.f32 %v245_v19  ;;  %v290_v26 = vadd.f32 %v289_v20, %v286_v13  ;;  %v296_v27 = vadd.f32 %v295_v21, %v287_v14  ;;  %v302_v28 = vadd.f32 %v301_v22, %v288_v15 }
  0x74   : > { %v379_v29 = vadd.f32 %v378_v23, %v377_v16  ;;  %v385_v36 = vadd.f32 %v384_v30, %v383_v24  ;;  %v391_v37 = vadd.f32 %v390_v31, %v389_v25  ;;  %v401_v13 = vrot.slane %v1298_v10, 4 }
  0x75   : > { %v291_v32 = vrot.slane %v290_v26, 2  ;;  %v297_v33 = vrot.slane %v296_v27, 2  ;;  %v303_v34 = vrot.slane %v302_v28, 2  ;;  %v1318_v20 = vsel %vm280_vm1, 1.0, %v1089_v9 }
  0x76   : > { %v380_v35 = vrot.slane %v379_v29, 1  ;;  %v386_v44 = vrot.slane %v385_v36, 1  ;;  %v392_v45 = vrot.slane %v391_v37, 1  ;;  %v402_v18 = vadd.f32 %v1298_v10, %v401_v13 }
  0x77   : > { %v292_v38 = vadd.f32 %v291_v32, %v290_v26  ;;  %v298_v39 = vadd.f32 %v297_v33, %v296_v27  ;;  %v304_v40 = vadd.f32 %v303_v34, %v302_v28  ;;  %v267_v22 = vmax.f32 %v1287_v3, 0.0 }
  0x78   : > { %v381_v42 = vadd.f32 %v380_v35, %v379_v29  ;;  %v387_v54 = vadd.f32 %v386_v44, %v385_v36  ;;  %v393_v55 = vadd.f32 %v392_v45, %v391_v37  ;;  %v403_v25 = vrot.slane %v402_v18, 2 }
  0x79   : > { %v293_v46 = vrot.slane %v292_v38, 1  ;;  %v299_v47 = vrot.slane %v298_v39, 1  ;;  %v305_v48 = vrot.slane %v304_v40, 1  ;;  %v419_v26 = vrot.slane %v1318_v20, 4 }
  0x7a   : > { %v394_v53 = vadd.f32 %v381_v42, %v373_v41  ;;  %v395_v59 = vadd.f32 %v387_v54, %v374_v43  ;;  %v396_v60 = vadd.f32 %v393_v55, %v375_v49  ;;  %v404_v30 = vadd.f32 %v403_v25, %v402_v18 }
  0x7b   : > { %v294_v56 = vadd.f32 %v293_v46, %v292_v38  ;;  %v300_v57 = vadd.f32 %v299_v47, %v298_v39  ;;  %v306_v58 = vadd.f32 %v305_v48, %v304_v40  ;;  %v420_v10 = vadd.f32 %v1318_v20, %v419_v26 }
  0x7c   : > { %397 = vst [vmem:[#allocation5] sm:$0x1] %v394_v53  ;;  %398 = vst [vmem:[#allocation5 + $0x1] sm:$0x1] %v395_v59  ;;  %vm447_vm8 = vcmask 1044480   ;;  %vm504_vm9 = vcmask (!%p816_p5), 1045504  }
  0x7d   : > { %v936_v61 = vpop.eup %935  ;;  %v307_v62 = vadd.f32 %v294_v56, %v283_v50  ;;  %v308_v63 = vadd.f32 %v300_v57, %v284_v51  ;;  %v309_v0 = vadd.f32 %v306_v58, %v285_v52  ;;  %399 = vst [vmem:[#allocation5 + $0x2] sm:$0x1] %v396_v60  ;;  %v421_v44 = vrot.slane %v420_v10, 2 }
  0x7e   : > { %v247_v1 = vadd.f32 1.0, %v936_v61  ;;  %v250_v4 = vmul.f32 -0.5, %v936_v61  ;;  %v253_v12 = vand.u32 2147483647, %v936_v61  ;;  %v405_v51 = vrot.slane %v404_v30, 1 }
  0x7f   : > { %310 = vst [vmem:[#allocation2] sm:$0x1] %v307_v62  ;;  %311 = vst [vmem:[#allocation2 + $0x1] sm:$0x1] %v308_v63  ;;  %v422_v58 = vadd.f32 %v421_v44, %v420_v10  ;;  %vm608_vm10 = vcmask (!%p816_p5), 1041409   ;;  %vm574_vm1 = vcmask (!%p816_p5), 0  }
  0x80   : > { %312 = vst [vmem:[#allocation2 + $0x2] sm:$0x1] %v309_v0  ;;  %937 = vrcp.f32 %v247_v1  ;;  %v251_v11 = vadd.f32 1.0, %v250_v4  ;;  %vm254_vm2 = vcmp.lt.f32.partialorder %v253_v12, 0.0004427343  ;;  %v406_v0 = vadd.f32 %v405_v51, %v404_v30 }
  0x81   : > { %939 = vlog2.f32 %v247_v1  ;;  %v313_v4 = vld [vmem:[#allocation3] sm:$0x1]  ;;  %v344_v51 = vld [vmem:[#allocation4 + $0x1] sm:$0x1] }
  0x82   : > { %v252_v15 = vmul.f32 %v936_v61, %v251_v11 }
  0x8a   : > { %v938_v14 = vpop.eup %937 }
  0x8b   : > { %v940_v16 = vpop.eup %939  ;;  %v258_v17 = vmul.f32 %v938_v14, %v247_v1 }
  0x8c   : > { %v249_v19 = vmul.f32 0.6931472, %v940_v16 }
  0x8d   : > { %v259_v21 = vsub.f32 2.0, %v258_v17 }
  0x8e   : > { %v255_v23 = vsel %vm254_vm2, %v252_v15, %v249_v19  ;;  %v315_v15 = vld [vmem:[#allocation3 + $0x2] sm:$0x1] }
  0x8f   : > { %v260_v24 = vmul.f32 %v938_v14, %v259_v21  ;;  %v268_v28 = vadd.f32 %v267_v22, %v255_v23  ;;  %v314_v14 = vld [vmem:[#allocation3 + $0x1] sm:$0x1] }
  0x91   : > { %v262_v27 = vmul.f32 %v936_v61, %v260_v24  ;;  %v269_v34 = vsub.f32 %v268_v28, %v1287_v3 }
  0x93   : > { %v263_v29 = vsel %vm261_vm3, %v260_v24, %v262_v27 }
  0x94   : > { %v316_v31 = vmul.f32 %v1289_v5, %v263_v29  ;;  %v317_v9 = vmul.f32 %v1293_v7, %v263_v29  ;;  %v318_v32 = vmul.f32 %v263_v29, %v1295_v8  ;;  %v270_v33 = vsub.f32 1.0, %v263_v29 }
  0x95   : > { %v271_v35 = vmul.f32 %v263_v29, %v263_v29  ;;  %v407_v36 = vrot.slane %v263_v29, 4  ;;  %v425_v37 = vmul.f32 %v1318_v20, %v263_v29 }
  0x96   : > { %v319_v38 = vrot.slane %v316_v31, 4  ;;  %v325_v39 = vrot.slane %v317_v9, 4  ;;  %v331_v40 = vrot.slane %v318_v32, 4  ;;  %v274_v41 = vmul.f32 %v270_v33, %v270_v33 }
  0x97   : > { %v272_v42 = vmul.f32 0.2, %v271_v35  ;;  %v408_v43 = vadd.f32 %v407_v36, %v263_v29  ;;  %v426_v45 = vrot.slane %v425_v37, 4  ;;  %v423_v33 = vrot.slane %v422_v58, 1 }
  0x98   : > { %v320_v46 = vadd.f32 %v319_v38, %v316_v31  ;;  %v326_v47 = vadd.f32 %v325_v39, %v317_v9  ;;  %v332_v48 = vadd.f32 %v331_v40, %v318_v32  ;;  %v275_v49 = vmul.f32 0.8, %v274_v41 }
  0x99   : > { %v273_v50 = vmul.f32 %v272_v42, %v268_v28  ;;  %v409_v52 = vrot.slane %v408_v43, 2  ;;  %v427_v59 = vadd.f32 %v426_v45, %v425_v37  ;;  %v424_v45 = vadd.f32 %v423_v33, %v422_v58 }
  0x9a   : > { %v321_v3 = vrot.slane %v320_v46, 2  ;;  %v327_v53 = vrot.slane %v326_v47, 2  ;;  %v333_v54 = vrot.slane %v332_v48, 2  ;;  %v276_v55 = vmul.f32 %v275_v49, %v269_v34 }
  0x9b   : > { %v410_v56 = vadd.f32 %v409_v52, %v408_v43  ;;  %v413_v57 = vrot.slane %v273_v50, 4  ;;  %v428_v19 = vrot.slane %v427_v59, 2  ;;  %v345_v52 = vld [vmem:[#allocation4 + $0x2] sm:$0x1] }
  0x9c   : > { %v322_v60 = vadd.f32 %v321_v3, %v320_v46  ;;  %v328_v61 = vadd.f32 %v327_v53, %v326_v47  ;;  %v334_v62 = vadd.f32 %v333_v54, %v332_v48  ;;  %v277_v63 = vsub.f32 %v276_v55, %v273_v50  ;;  %v343_v47 = vld [vmem:[#allocation4] sm:$0x1] }
  0x9d   : > { %v411_v1 = vrot.slane %v410_v56, 1  ;;  %v414_v2 = vadd.f32 %v413_v57, %v273_v50 }
  0x9e   : > { %v323_v6 = vrot.slane %v322_v60, 1  ;;  %v329_v11 = vrot.slane %v328_v61, 1  ;;  %v335_v12 = vrot.slane %v334_v62, 1  ;;  %v346_v13 = vmul.f32 %v1289_v5, %v277_v63 }
  0x9f   : > { %v347_v16 = vmul.f32 %v1293_v7, %v277_v63  ;;  %v348_v17 = vmul.f32 %v277_v63, %v1295_v8  ;;  %v415_v18 = vrot.slane %v414_v2, 2  ;;  %v412_v27 = vadd.f32 %v411_v1, %v410_v56 }
  0xa0   : > { %v324_v21 = vadd.f32 %v323_v6, %v322_v60  ;;  %v330_v22 = vadd.f32 %v329_v11, %v328_v61  ;;  %v336_v23 = vadd.f32 %v335_v12, %v334_v62  ;;  %v349_v24 = vrot.slane %v346_v13, 4  ;;  %v492_v6 = vld [vmem:[#allocation5 + $0x1] sm:$0x1] (!%p816_p5) }
  0xa1   : > { %v355_v25 = vrot.slane %v347_v16, 4  ;;  %v361_v26 = vrot.slane %v348_v17, 4  ;;  %v416_v28 = vadd.f32 %v415_v18, %v414_v2  ;;  %v429_v7 = vadd.f32 %v428_v19, %v427_v59  ;;  %v456_v18 = vld [vmem:[#allocation2 + $0x1] sm:$0x1] (!%p816_p5) }
  0xa2   : > { %v337_v29 = vadd.f32 %v324_v21, %v313_v4  ;;  %v338_v30 = vadd.f32 %v330_v22, %v314_v14  ;;  %v339_v10 = vadd.f32 %v336_v23, %v315_v15  ;;  %v350_v5 = vadd.f32 %v349_v24, %v346_v13  ;;  %v455_v13 = vld [vmem:[#allocation2] sm:$0x1] (!%p816_p5)  ;;  %v491_v14 = vld [vmem:[#allocation5] sm:$0x1] (!%p816_p5)  ;;  %v457_v22 = vld [vmem:[#allocation2 + $0x2] sm:$0x1] (!%p816_p5) }
  0xa3   : > { %v356_v31 = vadd.f32 %v355_v25, %v347_v16  ;;  %v362_v9 = vadd.f32 %v361_v26, %v348_v17  ;;  %v417_v32 = vrot.slane %v416_v28, 1  ;;  %v432_v34 = vmul.f32 %v1318_v20, %v277_v63  ;;  %v400_v63 = vld [vmem:[#allocation6] sm:$0x3f]  ;;  %v493_v17 = vld [vmem:[#allocation5 + $0x2] sm:$0x1] (!%p816_p5) }
  0xa4   : > { %340 = vst [vmem:[#allocation3] sm:$0x1] %v337_v29  ;;  %341 = vst [vmem:[#allocation3 + $0x1] sm:$0x1] %v338_v30  ;;  %v351_v8 = vrot.slane %v350_v5, 2  ;;  %v440_v40 = vsel %vm439_vm4, %v406_v0, %v412_v27  ;;  %v430_v43 = vrot.slane %v429_v7, 1 }
  0xa5   : > { %342 = vst [vmem:[#allocation3 + $0x2] sm:$0x1] %v339_v10  ;;  %v357_v35 = vrot.slane %v356_v31, 2  ;;  %v363_v36 = vrot.slane %v362_v9, 2  ;;  %v418_v37 = vadd.f32 %v417_v32, %v416_v28  ;;  %v433_v39 = vrot.slane %v432_v34, 4 }
  0xa6   : > { %v352_v38 = vadd.f32 %v351_v8, %v350_v5  ;;  %v431_v55 = vadd.f32 %v430_v43, %v429_v7  ;;  %v497_v12 = vsel (!%p816_p5), %vm439_vm4, %v492_v6, 0.0  ;;  %v458_v15 = vsel (!%p816_p5), %vm439_vm4, %v455_v13, 0.0 }
  0xa7   : > { %v358_v41 = vadd.f32 %v357_v35, %v356_v31  ;;  %v364_v42 = vadd.f32 %v363_v36, %v362_v9  ;;  %v434_v46 = vadd.f32 %v433_v39, %v432_v34  ;;  %v442_v50 = vsel %vm441_vm5, %v440_v40, %v418_v37  ;;  %498 = vadd.xlane.f32.xlu1 (!%p816_p5), %v497_v12 }
  0xa8   : > { %v353_v44 = vrot.slane %v352_v38, 1  ;;  %v444_v59 = vsel %vm443_vm6, %v442_v50, %v424_v45  ;;  %v494_v16 = vsel (!%p816_p5), %vm439_vm4, %v491_v14, 0.0  ;;  %v500_v19 = vsel (!%p816_p5), %vm439_vm4, %v493_v17, 0.0 }
  0xa9   : > { %v359_v48 = vrot.slane %v358_v41, 1  ;;  %v365_v49 = vrot.slane %v364_v42, 1  ;;  %v435_v3 = vrot.slane %v434_v46, 2  ;;  %v446_v62 = vsel %vm445_vm7, %v444_v59, %v431_v55 }
  0xaa   : > { %v354_v20 = vadd.f32 %v353_v44, %v352_v38  ;;  %v461_v21 = vsel (!%p816_p5), %vm439_vm4, %v456_v18, 0.0  ;;  %v464_v23 = vsel (!%p816_p5), %vm439_vm4, %v457_v22, 0.0  ;;  %v553_v59 = vlaneseq (!%p816_p5) }
  0xab   : > { %v360_v53 = vadd.f32 %v359_v48, %v358_v41  ;;  %v366_v54 = vadd.f32 %v365_v49, %v364_v42  ;;  %v436_v57 = vadd.f32 %v435_v3, %v434_v46  ;;  %459 = vadd.xlane.f32.xlu1 (!%p816_p5), %v458_v15 }
  0xac   : > { %v367_v56 = vadd.f32 %v354_v20, %v343_v47  ;;  %v469_v22 = vld [vmem:[#allocation3 + $0x2] sm:$0x1] (!%p816_p5) }
  0xad   : > { %v368_v60 = vadd.f32 %v360_v53, %v344_v51  ;;  %v369_v61 = vadd.f32 %v366_v54, %v345_v52  ;;  %v437_v58 = vrot.slane %v436_v57, 1 }
  0xae   : > { %370 = vst [vmem:[#allocation4] sm:$0x1] %v367_v56  ;;  %454 = sbr.rel (%p816_p5) target bundleno = 1106 (0x452), region = 44 }
  0xaf   : > { %371 = vst [vmem:[#allocation4 + $0x1] sm:$0x1] %v368_v60  ;;  %372 = vst [vmem:[#allocation4 + $0x2] sm:$0x1] %v369_v61  ;;  %v438_v0 = vadd.f32 %v437_v58, %v436_v57  ;;  %501 = vadd.xlane.f32.xlu1 (!%p816_p5), %v500_v19  ;;  %v1353_v60 = vshrl.u32 (!%p816_p5), %v553_v59, 7 }
  0xb0   : > { %v468_v19 = vld [vmem:[#allocation3 + $0x1] sm:$0x1] (!%p816_p5) }
  0xb1   : > { %v448_v1 = vsel %vm447_vm8, %v446_v62, %v438_v0  ;;  %v561_v61 = vsub.s32 (!%p816_p5), 0, %v1353_v60  ;;  %v565_v58 = vsub.s32 (!%p816_p5), 1, %v1353_v60  ;;  %v569_v62 = vsub.s32 (!%p816_p5), 2, %v1353_v60 }
  0xb2   : > { %v449_v2 = vadd.f32 %v448_v1, %v400_v63 }
  0xb3   : > { %v562_v63 = vrot.slane (!%p816_p5), %v1353_v60, %v561_v61  ;;  %v566_v0 = vrot.slane (!%p816_p5), %v1353_v60, %v565_v58  ;;  %v570_v1 = vrot.slane (!%p816_p5), %v1353_v60, %v569_v62 }
  0xb4   : > { %450 = vst [vmem:[#allocation6] sm:$0x3f] %v449_v2 }
  0xbb   : > { %v503_v4 = vld [vmem:[#allocation6] sm:$0x3f] }
  0xbc   : > { %v505_v11 = vsel %vm504_vm9, %v503_v4, 0.0  ;;  %vm611_vm9 = vcmask 1042434  }
  0xbd   : > { %506 = vadd.xlane.f32.xlu0 %v505_v11 }
  0xc1   : > { %495 = vadd.xlane.f32.xlu0 %v494_v16 }
  0xc5   : > { %462 = vadd.xlane.f32.xlu0 %v461_v21  ;;  %v473_v21 = vsel %vm439_vm4, %v468_v19, 0.0 }
  0xc9   : > { %465 = vadd.xlane.f32.xlu0 %v464_v23  ;;  %v476_v23 = vsel %vm439_vm4, %v469_v22, 0.0 }
 0x134   : > { %v499_v28 = vpop.xlane.xlu1 %498 }
 0x135   : > { %v655_v30 = vrot.slane %v499_v28, 7  ;;  %vm542_vm14 = vcmp.gt.f32.partialorder %v499_v28, 0.0 }
 0x138   : > { %v460_v9 = vpop.xlane.xlu1 %459 }
 0x13c   : > { %v1344_v7 = vpop.xlane.xlu1 %501 }
 0x13d   : > { %vm543_vm0 = vcmp.gt.f32.partialorder %v1344_v7, 0.0 }
 0x14a   : > { %v507_v24 = vpop.xlane.xlu0 %506 }
 0x14b   : > { %827 = vpush %v507_v24  ;;  %v509_v25 = vrot.slane %v507_v24, 1  ;;  %v511_v26 = vrot.slane %v507_v24, 2  ;;  %v513_v27 = vrot.slane %v507_v24, 3  ;;  %v515_v29 = vrot.slane %v507_v24, 4 }
 0x14c   : > { %v517_v10 = vrot.slane %v507_v24, 5  ;;  %v467_v24 = vld [vmem:[#allocation3] sm:$0x1] }
 0x14d   : > { %829 = vpush %v509_v25  ;;  %v470_v25 = vsel %vm439_vm4, %v467_v24, 0.0 }
 0x14e   : > { %831 = vpush %v511_v26  ;;  %v496_v5 = vpop.xlane.xlu0 %495 }
 0x14f   : > { %833 = vpush %v513_v27  ;;  %v1342_v31 = vsel %vm608_vm10, %v655_v30, %v496_v5  ;;  %vm541_vm12 = vcmp.gt.f32.partialorder %v496_v5, 0.0 }
 0x150   : > { %835 = vpush %v515_v29  ;;  %v480_v29 = vld [vmem:[#allocation4 + $0x1] sm:$0x1] }
 0x151   : > { %837 = vpush %v517_v10  ;;  %v485_v10 = vsel %vm439_vm4, %v480_v29, 0.0 }
 0x152   : > { %v463_v32 = vpop.xlane.xlu0 %462 }
 0x156   : > { %v466_v33 = vpop.xlane.xlu0 %465 }
 0x17c   : > { %s828_s12 = spop %827 }
 0x17d   : > { %v519_v8 = vstv %s828_s12 }
 0x17e   : > { %v520_v34 = vadd.f32 %v519_v8, %v496_v5  ;;  %v521_v35 = vadd.f32 %v519_v8, %v499_v28  ;;  %v522_v36 = vadd.f32 %v519_v8, %v1344_v7  ;;  %s1351_s13 = spop %829  ;;  %v481_v5 = vld [vmem:[#allocation4 + $0x2] sm:$0x1] }
 0x17f   : > { %s1355_s23 = spop %831 }
 0x180   : > { %v523_v37 = vsub.f32 %v520_v34, %v460_v9  ;;  %v524_v38 = vsub.f32 %v521_v35, %v463_v32  ;;  %v525_v39 = vsub.f32 %v522_v36, %v466_v33  ;;  %s1357_s5 = spop %833 }
 0x181   : > { %s1362_s25 = spop %835 }
 0x182   : > { %v529_v40 = vmax.f32 %v523_v37, 1.0  ;;  %v530_v41 = vmax.f32 %v524_v38, 1.0  ;;  %v531_v42 = vmax.f32 %v525_v39, 1.0  ;;  %vm526_vm11 = vcmp.gt.f32.partialorder %v523_v37, 0.0  ;;  %s1364_s27 = spop %837 }
 0x183   : > { %vm527_vm13 = vcmp.gt.f32.partialorder %v524_v38, 0.0  ;;  %vm528_vm15 = vcmp.gt.f32.partialorder %v525_v39, 0.0 }
 0x184   : > { %941 = vrcp.f32 %v529_v40 }
 0x185   : > { %943 = vrcp.f32 %v530_v41 }
 0x186   : > { %945 = vrcp.f32 %v531_v42 }
 0x18e   : > { %v942_v43 = vpop.eup %941 }
 0x18f   : > { %v944_v44 = vpop.eup %943  ;;  %v533_v45 = vmul.f32 %v942_v43, %v460_v9  ;;  %v488_v9 = vsel %vm439_vm4, %v481_v5, 0.0 }
 0x190   : > { %v946_v46 = vpop.eup %945  ;;  %v535_v47 = vmul.f32 %v944_v44, %v463_v32  ;;  %v479_v32 = vld [vmem:[#allocation4] sm:$0x1] }
 0x191   : > { %v537_v48 = vmul.f32 %v946_v46, %v466_v33  ;;  %v538_v49 = vsel %vm526_vm11, %v533_v45, 0.0  ;;  %v482_v8 = vsel %vm439_vm4, %v479_v32, 0.0  ;;  %vm615_vm11 = vcmask 2048  }
 0x192   : > { %v539_v50 = vsel %vm527_vm13, %v535_v47, 0.0  ;;  %v544_v20 = vsel %vm541_vm12, %v538_v49, 0.0  ;;  %vm691_vm12 = vcmp.eq.s32.totalorder %v1353_v60, 0 }
 0x193   : > { %v540_v51 = vsel %vm528_vm15, %v537_v48, 0.0  ;;  %v545_v52 = vsel %vm542_vm14, %v539_v50, 0.0  ;;  %v547_v3 = vsel %vm439_vm4, %v544_v20, -inf  ;;  %v657_v50 = vrot.slane %v1344_v7, 6 }
 0x194   : > { %v546_v53 = vsel %vm543_vm0, %v540_v51, 0.0  ;;  %v548_v54 = vsel %vm439_vm4, %v545_v52, -inf  ;;  %v1090_v51 = vmov 0.0  }
 0x195   : > { %v550_v55 = vmax.f32 %v547_v3, %v548_v54  ;;  %v549_v56 = vsel %vm439_vm4, %v546_v53, -inf }
 0x197   : > { %v551_v57 = vmax.f32 %v550_v55, %v549_v56  ;;  %v658_v56 = vsel %vm611_vm9, %v657_v50, %v1342_v31 }
 0x199   : > { %839 = vpush %v551_v57 }
 0x1ca   : > { %s840_s30 = spop %839 }
 0x1cb   : > { %v555_v2 = vstv %s840_s30  ;;  %p601_p9 = scmp.gt.f32.partialorder %s840_s30, 0.0 }
 0x1cc   : > { %vm556_vm2 = vcmp.eq.f32.partialorder %v544_v20, %v555_v2  ;;  %vm557_vm3 = vcmp.eq.f32.partialorder %v545_v52, %v555_v2  ;;  %vm558_vm5 = vcmp.eq.f32.partialorder %v546_v53, %v555_v2 }
 0x1cd   : > { %v571_v4 = vsel %vm556_vm2, %v562_v63, 3  ;;  %v572_v6 = vsel %vm557_vm3, %v566_v0, 3  ;;  %v573_v11 = vsel %vm558_vm5, %v570_v1, 3  ;;  %s602_s8 = scalar_select %p601_p9, 1, 0 }
 0x1ce   : > { %v575_v12 = vsel %vm574_vm1, %v571_v4, 2147483647  ;;  %v576_v13 = vsel %vm574_vm1, %v572_v6, 2147483647  ;;  %v577_v14 = vsel %vm574_vm1, %v573_v11, 2147483647 }
 0x1cf   : > { %vm578_vm6 = vcmp.lt.s32.totalorder %v575_v12, %v576_v13  ;;  %s1369_s20 = scvt.s32.f32 %s602_s8 }
 0x1d0   : > { %v579_v15 = vsel %vm578_vm6, %v575_v12, %v576_v13 }
 0x1d1   : > { %vm580_vm7 = vcmp.lt.s32.totalorder %v579_v15, %v577_v14  ;;  %s1372_s21 = ssub.f32 1.0, %s1369_s20 }
 0x1d2   : > { %v581_v16 = vsel %vm580_vm7, %v579_v15, %v577_v14 }
 0x1d3   : > { %v583_v17 = vshra.s32 %v581_v16, 16  ;;  %s628_s6 = smul.f32 %s1364_s27, %s1372_s21  ;;  %v582_v26 = vand.u32 65535, %v581_v16 }
 0x1d4   : > { %s672_s28 = smul.f32 %s1357_s5, %s1372_s21 }
 0x1d5   : > { %v585_v18 = vcvt.s32.f32 %v583_v17  ;;  %v584_v28 = vcvt.s32.f32 %v582_v26  ;;  %s650_s8 = smul.f32 %s1362_s25, %s1372_s21 }
 0x1d7   : > { %586 = vmin.xlane.f32.xlu1 %v585_v18 }
 0x1db   : > { %474 = vadd.xlane.f32.xlu1 %v473_v21 }
 0x1df   : > { %477 = vadd.xlane.f32.xlu1 %v476_v23 }
 0x1e3   : > { %471 = vadd.xlane.f32.xlu1 %v470_v25 }
 0x264   : > { %v587_v27 = vpop.xlane.xlu1 %586 }
 0x265   : > { %vm588_vm8 = vcmp.eq.f32.partialorder %v585_v18, %v587_v27  ;;  %v593_v33 = vcvt.f32.s32 %v587_v27 }
 0x266   : > { %v589_v30 = vsel %vm588_vm8, %v584_v28, inf }
 0x267   : > { %590 = vmin.xlane.f32.xlu0 %v589_v30  ;;  %v594_v35 = vshll.u32 %v593_v33, 16 }
 0x268   : > { %v475_v39 = vpop.xlane.xlu1 %474 }
 0x269   : > { %v633_v43 = vrot.slane %v475_v39, 7 }
 0x26b   : > { %486 = vadd.xlane.f32.xlu0 %v485_v10 }
 0x26c   : > { %v478_v41 = vpop.xlane.xlu1 %477 }
 0x26d   : > { %v635_v47 = vrot.slane %v478_v41, 6 }
 0x26f   : > { %489 = vadd.xlane.f32.xlu0 %v488_v9 }
 0x270   : > { %v472_v45 = vpop.xlane.xlu1 %471 }
 0x271   : > { %v634_v49 = vsel %vm608_vm10, %v633_v43, %v472_v45 }
 0x272   : > { %v636_v3 = vsel %vm611_vm9, %v635_v47, %v634_v49 }
 0x273   : > { %483 = vadd.xlane.f32.xlu0 %v482_v8 }
 0x2f4   : > { %v591_v34 = vpop.xlane.xlu0 %590 }
 0x2f5   : > { %v592_v36 = vcvt.f32.s32 %v591_v34 }
 0x2f7   : > { %v595_v37 = vadd.s32 %v594_v35, %v592_v36 }
 0x2f8   : > { %v487_v38 = vpop.xlane.xlu0 %486 }
 0x2f9   : > { %841 = vpush %v595_v37  ;;  %v607_v42 = vrot.slane %v487_v38, 7 }
 0x2fc   : > { %v490_v40 = vpop.xlane.xlu0 %489 }
 0x2fd   : > { %v610_v46 = vrot.slane %v490_v40, 6 }
 0x300   : > { %v484_v44 = vpop.xlane.xlu0 %483 }
 0x301   : > { %v609_v48 = vsel %vm608_vm10, %v607_v42, %v484_v44  ;;  %vm692_vm10 = vcmp.eq.s32.totalorder %v1353_v60, 1 }
 0x302   : > { %v612_v53 = vsel %vm611_vm9, %v610_v46, %v609_v48 }
 0x32a   : > { %s842_s17 = spop %841 }
 0x32b   : > { %v597_v20 = vstv %s842_s17 }
 0x32c   : > { %vm598_vm4 = vcmp.eq.s32.totalorder %v1353_v60, %v597_v20 }
 0x32d   : > { %v817_v52 = vsel %vm598_vm4, 1.0, %v1090_v51 }
 0x32e   : > { %v638_v54 = vmul.f32 %v817_v52, %v636_v3  ;;  %v614_v55 = vmul.f32 %v817_v52, %v612_v53  ;;  %v660_v61 = vmul.f32 %v817_v52, %v658_v56 }
 0x330   : > { %v639_v57 = vsel %vm615_vm11, %v638_v54, 0.0  ;;  %v616_v59 = vsel %vm615_vm11, %v614_v55, 0.0  ;;  %v661_v58 = vsel %vm615_vm11, %v660_v61, 0.0 }
 0x331   : > { %640 = vadd.xlane.f32.xlu0 %v639_v57  ;;  %617 = vadd.xlane.f32.xlu1 %v616_v59 }
 0x335   : > { %662 = vadd.xlane.f32.xlu1 %v661_v58 }
 0x3be   : > { %v618_v7 = vpop.xlane.xlu1 %617  ;;  %v641_v62 = vpop.xlane.xlu0 %640 }
 0x3bf   : > { %v619_v63 = vrot.slane %v618_v7, 4  ;;  %v642_v0 = vrot.slane %v641_v62, 4 }
 0x3c1   : > { %v620_v1 = vadd.f32 %v619_v63, %v618_v7  ;;  %v643_v2 = vadd.f32 %v642_v0, %v641_v62 }
 0x3c2   : > { %v663_v4 = vpop.xlane.xlu1 %662 }
 0x3c3   : > { %v621_v6 = vrot.slane %v620_v1, 2  ;;  %v644_v11 = vrot.slane %v643_v2, 2  ;;  %v664_v12 = vrot.slane %v663_v4, 4 }
 0x3c5   : > { %v645_v13 = vadd.f32 %v644_v11, %v643_v2  ;;  %v665_v31 = vadd.f32 %v664_v12, %v663_v4  ;;  %v622_v14 = vadd.f32 %v621_v6, %v620_v1 }
 0x3c7   : > { %v666_v15 = vrot.slane %v665_v31, 2  ;;  %v623_v16 = vrot.slane %v622_v14, 1  ;;  %v646_v17 = vrot.slane %v645_v13, 1 }
 0x3c9   : > { %v667_v18 = vadd.f32 %v666_v15, %v665_v31  ;;  %v624_v19 = vadd.f32 %v623_v16, %v622_v14  ;;  %v647_v21 = vadd.f32 %v646_v17, %v645_v13 }
 0x3cb   : > { %843 = vpush %v624_v19  ;;  %v668_v22 = vrot.slane %v667_v18, 1 }
 0x3cc   : > { %845 = vpush %v647_v21 }
 0x3cd   : > { %v669_v23 = vadd.f32 %v668_v22, %v667_v18 }
 0x3cf   : > { %847 = vpush %v669_v23 }
 0x3fc   : > { %s844_s7 = spop %843 }
 0x3fd   : > { %s626_s24 = smul.f32 %s844_s7, %s1369_s20  ;;  %s846_s9 = spop %845 }
 0x3fe   : > { %s649_s12 = smul.f32 %s846_s9, %s1369_s20 }
 0x3ff   : > { %s1391_s22 = sadd.f32 %s628_s6, %s626_s24 }
 0x400   : > { %s848_s26 = spop %847  ;;  %s651_s0 = sadd.f32 %s650_s8, %s649_s12 }
 0x401   : > { %s671_s3 = smul.f32 %s848_s26, %s1369_s20  ;;  %s674_s7 = sadd.f32 %s1355_s23, %s1391_s22 }
 0x402   : > { %s676_s5 = smul.f32 2.0, %s651_s0 }
 0x403   : > { %s673_s30 = sadd.f32 %s672_s28, %s671_s3  ;;  %v696_v30 = vstv %s674_s7 }
 0x404   : > { %s677_s27 = sadd.f32 1.0, %s676_s5 }
 0x405   : > { %s675_s17 = sadd.f32 %s1351_s13, %s673_s30 }
 0x407   : > { %s678_s1 = sadd.f32 1.0, %s675_s17 }
 0x408   : > { %s684_s2 = ssub.f32 %s675_s17, %s651_s0 }
 0x409   : > { %v679_v24 = vstv %s678_s1 }
 0x40a   : > { %947 = vrcp.f32 %v679_v24  ;;  %s685_s19 = sadd.f32 1e-06, %s684_s2 }
 0x40c   : > { %v686_v25 = vstv %s685_s19 }
 0x40d   : > { %949 = vrcp.f32 %v686_v25 }
 0x414   : > { %v948_v26 = vpop.eup %947 }
 0x415   : > { %849 = vpush %v948_v26 }
 0x417   : > { %v950_v27 = vpop.eup %949 }
 0x418   : > { %851 = vpush %v950_v27 }
 0x446   : > { %s850_s20 = spop %849 }
 0x447   : > { %s682_s25 = smul.f32 %s850_s20, %s677_s27 }
 0x449   : > { %s852_s13 = spop %851  ;;  %s683_s21 = ssub.f32 1.0, %s682_s25 }
 0x44a   : > { %s689_s6 = smul.f32 %s852_s13, %s651_s0 }
 0x44b   : > { %v693_v28 = vstv %s683_s21 }
 0x44c   : > { %s690_s1 = ssub.f32 1.0, %s689_s6 }
 0x44e   : > { %v694_v29 = vstv %s690_s1 }
 0x44f   : > { %v695_v10 = vsel %vm692_vm10, %v693_v28, %v694_v29 }
 0x450   : > { %v697_v5 = vsel %vm691_vm12, %v696_v30, %v695_v10 }
 0x451   : > { %698 = vst [vmem:[%s1284_s4] sm:$0x7] %v697_v5 }
 0x452 PF: > { %s18_s16 = sadd.s32 1, %s1081_s16   ;;  %s1447_s0 = sld [smem:[#allocation13_spill]] }
 0x453   : > { %p15_p3 = scmp.ge.s32.totalorder %s18_s16, 6   ;;  %s1448_s9 = smov %s1057_s10 }
 0x454   : > { %s1449_s10 = smov %s1061_s11  ;;  %s1450_s11 = smov %s1176_s29 }
 0x455   : > { %s1451_s12 = smov %s1073_s14  ;;  %s1452_s13 = smov %s1077_s15 }
 0x456   : > { %s1453_s14 = smov %s1456_s18  ;;  %17 = sbr.rel (!%p15_p3) target bundleno = 11 (0xb), region = 89 }
 0x458   : > { %s1454_s15 = smov %s1447_s0 }
 0x45d   :  { %718 = vsyncpa [#allocation8], 1 }
 0x45e   :  { %720 = vsyncpa [#allocation8 + $0x1], 1 }
 0x45f   :  { %721 = vsyncpa [#allocation10], 1 }
 0x460   :  { %723 = vsyncpa [#allocation10 + $0x1], 1 }

</bundles_post_ra>
